<compile_context>
chip_gen: v5e
topology: v5e:2x2
jax: 0.10.0
libtpu: 0.0.40
codegen_flags: <defaults>
</compile_context>

<pallas_src>
import functools

import jax
import jax.numpy as jnp
from jax import lax
from jax.experimental import pallas as pl
from jax.experimental.pallas import tpu as pltpu


def _round_up(v, m):
    return ((v + m - 1) // m) * m


def gin_kernel(adj_ref, x_ref, w1_ref, w2_ref, pv_ref, out_ref, xbuf_ref,
               *, num_layers, tm):
    """One grid step = one (layer, row-tile): aggregation + MLP + ReLU + folded BN.

    adj_ref : (TM, NP)  bf16   row tile of adj_t (pipelined per row tile)
    x_ref   : (NP, CP)  bf16   input features (resident; constant block index)
    w1_ref  : (1, CP, CP) bf16 layer-l weight (pipelined per layer)
    w2_ref  : (1, CP, CP) bf16
    pv_ref  : (1, 4, CP)  f32  [b1, b2, bn_scale, bn_shift] for layer l
    out_ref : (NP, CP)  f32    resident output, written on the last layer only
    xbuf_ref: (2, NP, CP) bf16 ping-pong activation buffer (persists across grid)
    """
    l = pl.program_id(0)
    i = pl.program_id(1)
    row0 = pl.multiple_of(i * tm, tm)

    # Prime the ping-pong buffer with the input features before layer 0 starts
    # (layer 0 reads slot 1, writes slot 0; parity alternates per layer).
    @pl.when((l == 0) & (i == 0))
    def _():
        xbuf_ref[1] = x_ref[...]

    adj_t = adj_ref[...]                       # (TM, NP) bf16
    w1 = w1_ref[0]                             # (CP, CP) bf16
    w2 = w2_ref[0]                             # (CP, CP) bf16
    pv = pv_ref[0]                             # (4, CP)  f32
    b1, b2 = pv[0:1, :], pv[1:2, :]
    scale, shift = pv[2:3, :], pv[3:4, :]

    def layer_body(src_ref, dst_ref):
        x_full = src_ref[...]                                       # (NP, CP) bf16
        x_self = src_ref[pl.ds(row0, tm), :].astype(jnp.float32)    # (TM, CP) f32
        # GINConv aggregation (eps = 0): h = adj_t @ x + (1 + eps) * x
        # bf16 MXU operands, f32 accumulation.
        h = jnp.dot(adj_t, x_full, preferred_element_type=jnp.float32) + x_self
        # MLP: Linear -> ReLU -> Linear (weights pre-transposed to (in, out)).
        h = jnp.maximum(
            jnp.dot(h.astype(jnp.bfloat16), w1,
                    preferred_element_type=jnp.float32) + b1, 0.0)
        h = jnp.dot(h.astype(jnp.bfloat16), w2,
                    preferred_element_type=jnp.float32) + b2
        # Outer F.relu, then eval-mode BatchNorm folded into a single f32 FMA.
        y = jnp.maximum(h, 0.0) * scale + shift

        @pl.when(l < num_layers - 1)
        def _():
            dst_ref[pl.ds(row0, tm), :] = y.astype(jnp.bfloat16)

        @pl.when(l == num_layers - 1)
        def _():
            out_ref[pl.ds(row0, tm), :] = y

    # Slot selection by layer parity; pl.when keeps every slot index static.
    @pl.when(l % 2 == 0)
    def _():
        layer_body(xbuf_ref.at[1], xbuf_ref.at[0])

    @pl.when(l % 2 == 1)
    def _():
        layer_body(xbuf_ref.at[0], xbuf_ref.at[1])


def pack_gin_params(params):
    """One-time host-side packing: pad to 128 lanes, fold BN, cast weights to bf16."""
    c_in = params[0][0].shape[0]
    hidden = params[0][2].shape[1]
    CP = max(_round_up(c_in, 128), _round_up(hidden, 128))
    w1_list, w2_list, pv_list = [], [], []
    for (w1, b1, w2, b2, gamma, beta, mean, var) in params:
        din = w1.shape[0]
        w1p = jnp.zeros((CP, CP), jnp.float32).at[:din, :hidden].set(w1)
        w2p = jnp.zeros((CP, CP), jnp.float32).at[:hidden, :hidden].set(w2)
        scale = gamma * lax.rsqrt(var + 1e-5)
        shift = beta - mean * scale
        pv = jnp.zeros((4, CP), jnp.float32)
        pv = pv.at[0, :hidden].set(b1[0])
        pv = pv.at[1, :hidden].set(b2[0])
        pv = pv.at[2, :hidden].set(scale[0])
        pv = pv.at[3, :hidden].set(shift[0])
        w1_list.append(w1p.astype(jnp.bfloat16))
        w2_list.append(w2p.astype(jnp.bfloat16))
        pv_list.append(pv)
    return jnp.stack(w1_list), jnp.stack(w2_list), jnp.stack(pv_list)


@functools.partial(jax.jit, static_argnames=("hidden",))
def gin_forward(x, adj, w1_s, w2_s, pv_s, *, hidden):
    """Pads x/adj and runs the fused multi-layer Pallas kernel."""
    N, c_in = x.shape
    num_layers, CP, _ = w1_s.shape

    NP = _round_up(N, 128)                      # lane-dense node dim (K of aggregation)
    TM = 256 if NP % 256 == 0 else 128          # row tile (256 feeds v6e/v7x MXU fully)
    num_tiles = NP // TM

    # Zero-pad node features and adjacency (exact: 0/1 adjacency is lossless in bf16,
    # padded rows/cols stay 0 so real rows never see padding garbage).
    x_p = jnp.zeros((NP, CP), jnp.bfloat16).at[:N, :c_in].set(x.astype(jnp.bfloat16))
    adj_p = jnp.zeros((NP, NP), jnp.bfloat16).at[:N, :N].set(adj.astype(jnp.bfloat16))

    # VMEM footprint: double-buffered adj tile + weights, resident x / xbuf / out.
    footprint = (2 * TM * NP * 2            # adj row tile, double-buffered, bf16
                 + 2 * 2 * CP * CP * 2      # w1 + w2 blocks, double-buffered, bf16
                 + 2 * 4 * CP * 4           # pvec blocks
                 + 2 * NP * CP * 2          # x input (resident)
                 + 2 * NP * CP * 2          # ping-pong activation scratch
                 + 2 * NP * CP * 4)         # output (resident, f32)
    vmem_limit = int(min(max(2 * footprint + (4 << 20), 32 << 20), 64 << 20))

    kernel = functools.partial(gin_kernel, num_layers=num_layers, tm=TM)
    grid_spec = pltpu.PrefetchScalarGridSpec(
        num_scalar_prefetch=0,
        grid=(num_layers, num_tiles),
        in_specs=[
            pl.BlockSpec((TM, NP), lambda l, i: (i, 0)),       # adj row tile
            pl.BlockSpec((NP, CP), lambda l, i: (0, 0)),       # x (resident)
            pl.BlockSpec((1, CP, CP), lambda l, i: (l, 0, 0)),  # w1 per layer
            pl.BlockSpec((1, CP, CP), lambda l, i: (l, 0, 0)),  # w2 per layer
            pl.BlockSpec((1, 4, CP), lambda l, i: (l, 0, 0)),   # packed vectors
        ],
        out_specs=pl.BlockSpec((NP, CP), lambda l, i: (0, 0)),  # resident output
        scratch_shapes=[pltpu.VMEM((2, NP, CP), jnp.bfloat16)],
    )
    out = pl.pallas_call(
        kernel,
        out_shape=jax.ShapeDtypeStruct((NP, CP), jnp.float32),
        grid_spec=grid_spec,
        compiler_params=pltpu.CompilerParams(
            # Row axis kept "arbitrary": layer l+1 needs ALL rows of layer l, so
            # splitting row tiles across v7x's two TensorCores would be incorrect.
            dimension_semantics=("arbitrary", "arbitrary"),
            vmem_limit_bytes=vmem_limit,
        ),
    )(adj_p, x_p, w1_s, w2_s, pv_s)

    # TODO(synk): F.dropout with training=True is stochastic; eval-mode (identity) used here.
    return out[:N, :hidden]


def init_gin_params(key, in_channels, hidden_channels, num_layers):
    """Deterministic synthetic parameters (shapes match the PyTorch module)."""
    params = []
    dims_in = [in_channels] + [hidden_channels] * (num_layers - 1)
    for layer in range(num_layers):
        din = dims_in[layer]
        key, k1, k2, k3, k4, k5, k6, k7, k8 = jax.random.split(key, 9)
        w1 = jax.random.normal(k1, (din, hidden_channels), jnp.float32) / jnp.sqrt(float(din))
        b1 = 0.01 * jax.random.normal(k2, (1, hidden_channels), jnp.float32)
        w2 = jax.random.normal(k3, (hidden_channels, hidden_channels), jnp.float32) / jnp.sqrt(float(hidden_channels))
        b2 = 0.01 * jax.random.normal(k4, (1, hidden_channels), jnp.float32)
        gamma = 1.0 + 0.1 * jax.random.normal(k5, (1, hidden_channels), jnp.float32)
        beta = 0.1 * jax.random.normal(k6, (1, hidden_channels), jnp.float32)
        running_mean = 0.1 * jax.random.normal(k7, (1, hidden_channels), jnp.float32)
        running_var = jax.random.uniform(k8, (1, hidden_channels), jnp.float32, 0.5, 1.5)
        params.append((w1, b1, w2, b2, gamma, beta, running_mean, running_var))
    return params


def gin_reference(x, adj, params):
    """Pure-JAX f32 reference for correctness check."""
    for (w1, b1, w2, b2, gamma, beta, mean, var) in params:
        h = jnp.dot(adj, x, preferred_element_type=jnp.float32) + x
        h = jnp.maximum(jnp.dot(h, w1, preferred_element_type=jnp.float32) + b1, 0.0)
        h = jnp.dot(h, w2, preferred_element_type=jnp.float32) + b2
        h = jnp.maximum(h, 0.0)
        x = (h - mean) * lax.rsqrt(var + 1e-5) * gamma + beta
    return x


if __name__ == "__main__":
    num_nodes = 64
    in_channels = 16
    hidden_channels = 32
    num_layers = 3
    dropout = 0.5  # inactive in eval mode

    key = jax.random.PRNGKey(0)
    key, kx, ka, kp = jax.random.split(key, 4)

    # Node features (N, C_in)
    x = jax.random.normal(kx, (num_nodes, in_channels), jnp.float32)

    # Dense symmetric adjacency (adj_t), no self loops.
    a = (jax.random.uniform(ka, (num_nodes, num_nodes)) < 0.2).astype(jnp.float32)
    adj = jnp.maximum(a, a.T)
    adj = adj * (1.0 - jnp.eye(num_nodes, dtype=jnp.float32))

    params = init_gin_params(kp, in_channels, hidden_channels, num_layers)

    # One-time packing (hoisted out of the per-call path).
    w1_s, w2_s, pv_s = pack_gin_params(params)

    out = gin_forward(x, adj, w1_s, w2_s, pv_s, hidden=hidden_channels)
    out = jax.block_until_ready(out)

    ref = gin_reference(x, adj, params)
    assert out.shape == (num_nodes, hidden_channels)
    # bf16 MXU operands with f32 accumulation -> small mixed-precision error vs f32 ref.
    err = float(jnp.max(jnp.abs(out - ref)))
    ref_scale = float(jnp.max(jnp.abs(ref))) + 1e-6
    assert err <= 0.03 * ref_scale + 0.03, f"max abs err {err} (ref scale {ref_scale})"

    print("KERNEL_OK")
</pallas_src>

<mosaic_0001>
module attributes {stable_mosaic.version = 11 : i64} {
  func.func @gin_kernel(%arg0: i32, %arg1: i32, %arg2: memref<128x128xbf16, #tpu.memory_space<vmem>>, %arg3: memref<128x128xbf16, #tpu.memory_space<vmem>>, %arg4: memref<1x128x128xbf16, #tpu.memory_space<vmem>>, %arg5: memref<1x128x128xbf16, #tpu.memory_space<vmem>>, %arg6: memref<1x4x128xf32, #tpu.memory_space<vmem>>, %arg7: memref<128x128xf32, #tpu.memory_space<vmem>>, %arg8: memref<2x128x128xbf16, #tpu.memory_space<vmem>>) attributes {dimension_semantics = [#tpu.dimension_semantics<arbitrary>, #tpu.dimension_semantics<arbitrary>], iteration_bounds = array<i64: 3, 1>, scalar_prefetch = 0 : i64, scratch_operands = 1 : i64, tpu.core_type = #tpu.core_type<tc>, window_params = [{transform_indices = @transform_0, window_bounds = array<i64: 128, 128>}, {pipeline_mode = #tpu.pipeline_mode<synchronous>, transform_indices = @transform_1, window_bounds = array<i64: 128, 128>}, {transform_indices = @transform_2, window_bounds = array<i64: 1, 128, 128>}, {transform_indices = @transform_3, window_bounds = array<i64: 1, 128, 128>}, {transform_indices = @transform_4, window_bounds = array<i64: 1, 4, 128>}, {pipeline_mode = #tpu.pipeline_mode<synchronous>, transform_indices = @transform_5, window_bounds = array<i64: 128, 128>}]} {
    %c128_i32 = arith.constant 128 : i32
    %0 = arith.muli %arg1, %c128_i32 : i32
    %1 = tpu.assume_multiple %0, 128 : i32
    %c0_i32 = arith.constant 0 : i32
    %2 = arith.cmpi eq, %arg0, %c0_i32 : i32
    %c0_i32_0 = arith.constant 0 : i32
    %3 = arith.cmpi eq, %arg1, %c0_i32_0 : i32
    %4 = arith.andi %2, %3 : i1
    %5 = arith.extui %4 : i1 to i32
    %c0_i32_1 = arith.constant 0 : i32
    %6 = arith.cmpi ne, %5, %c0_i32_1 : i32
    scf.if %6 {
      %c0_26 = arith.constant 0 : index
      %c0_27 = arith.constant 0 : index
      %44 = vector.load %arg3[%c0_26, %c0_27] : memref<128x128xbf16, #tpu.memory_space<vmem>>, vector<128x128xbf16>
      %c1 = arith.constant 1 : index
      %c0_28 = arith.constant 0 : index
      %c0_29 = arith.constant 0 : index
      %45 = vector.load %arg8[%c1, %c0_28, %c0_29] : memref<2x128x128xbf16, #tpu.memory_space<vmem>>, vector<1x128x128xbf16>
      %46 = vector.shape_cast %45 : vector<1x128x128xbf16> to vector<128x128xbf16>
      %47 = vector.shape_cast %44 : vector<128x128xbf16> to vector<1x128x128xbf16>
      tpu.vector_store %arg8[%c1, %c0_28, %c0_29], %47 {strides = array<i32>} : memref<2x128x128xbf16, #tpu.memory_space<vmem>>, vector<1x128x128xbf16>,
    } else {
    }
    %c0 = arith.constant 0 : index
    %c0_2 = arith.constant 0 : index
    %7 = vector.load %arg2[%c0, %c0_2] : memref<128x128xbf16, #tpu.memory_space<vmem>>, vector<128x128xbf16>
    %c0_3 = arith.constant 0 : index
    %c0_4 = arith.constant 0 : index
    %c0_5 = arith.constant 0 : index
    %8 = vector.load %arg4[%c0_3, %c0_4, %c0_5] : memref<1x128x128xbf16, #tpu.memory_space<vmem>>, vector<1x128x128xbf16>
    %9 = vector.shape_cast %8 : vector<1x128x128xbf16> to vector<128x128xbf16>
    %c0_6 = arith.constant 0 : index
    %c0_7 = arith.constant 0 : index
    %c0_8 = arith.constant 0 : index
    %10 = vector.load %arg5[%c0_6, %c0_7, %c0_8] : memref<1x128x128xbf16, #tpu.memory_space<vmem>>, vector<1x128x128xbf16>
    %11 = vector.shape_cast %10 : vector<1x128x128xbf16> to vector<128x128xbf16>
    %c0_9 = arith.constant 0 : index
    %c0_10 = arith.constant 0 : index
    %c0_11 = arith.constant 0 : index
    %12 = vector.load %arg6[%c0_9, %c0_10, %c0_11] : memref<1x4x128xf32, #tpu.memory_space<vmem>>, vector<1x4x128xf32>
    %13 = vector.shape_cast %12 : vector<1x4x128xf32> to vector<4x128xf32>
    %14 = vector.extract_strided_slice %13 {offsets = [0, 0], sizes = [1, 128], strides = [1, 1]} : vector<4x128xf32> to vector<1x128xf32>
    %15 = vector.extract_strided_slice %13 {offsets = [1, 0], sizes = [1, 128], strides = [1, 1]} : vector<4x128xf32> to vector<1x128xf32>
    %16 = vector.extract_strided_slice %13 {offsets = [2, 0], sizes = [1, 128], strides = [1, 1]} : vector<4x128xf32> to vector<1x128xf32>
    %17 = vector.extract_strided_slice %13 {offsets = [3, 0], sizes = [1, 128], strides = [1, 1]} : vector<4x128xf32> to vector<1x128xf32>
    %c2_i32 = arith.constant 2 : i32
    %c0_i32_12 = arith.constant 0 : i32
    %18 = arith.cmpi eq, %c2_i32, %c0_i32_12 : i32
    %c1_i32 = arith.constant 1 : i32
    %19 = arith.select %18, %c1_i32, %c2_i32 : i32
    %20 = arith.remsi %arg0, %19 : i32
    %c0_i32_13 = arith.constant 0 : i32
    %21 = arith.cmpi ne, %20, %c0_i32_13 : i32
    %c0_i32_14 = arith.constant 0 : i32
    %22 = arith.cmpi slt, %20, %c0_i32_14 : i32
    %c0_i32_15 = arith.constant 0 : i32
    %23 = arith.cmpi slt, %19, %c0_i32_15 : i32
    %24 = arith.xori %22, %23 : i1
    %25 = arith.andi %24, %21 : i1
    %26 = arith.addi %20, %19 : i32
    %27 = arith.select %25, %26, %20 : i32
    %c0_i32_16 = arith.constant 0 : i32
    %28 = arith.cmpi eq, %27, %c0_i32_16 : i32
    %29 = arith.extui %28 : i1 to i32
    %c0_i32_17 = arith.constant 0 : i32
    %30 = arith.cmpi ne, %29, %c0_i32_17 : i32
    scf.if %30 {
      %c1 = arith.constant 1 : index
      %c0_26 = arith.constant 0 : index
      %c0_27 = arith.constant 0 : index
      %44 = vector.load %arg8[%c1, %c0_26, %c0_27] : memref<2x128x128xbf16, #tpu.memory_space<vmem>>, vector<1x128x128xbf16>
      %45 = vector.shape_cast %44 : vector<1x128x128xbf16> to vector<128x128xbf16>
      %c1_i32_28 = arith.constant 1 : i32
      %c0_i32_29 = arith.constant 0 : i32
      %c0_i32_30 = arith.constant 0 : i32
      %46 = tpu.memref_slice %arg8[%c1_i32_28, %c0_i32_29, %c0_i32_30] : memref<2x128x128xbf16, #tpu.memory_space<vmem>> -> memref<1x128x128xbf16, #tpu.memory_space<vmem>>
      %47 = tpu.memref_squeeze %46 : memref<1x128x128xbf16, #tpu.memory_space<vmem>> -> memref<128x128xbf16, #tpu.memory_space<vmem>>
      %48 = arith.index_cast %1 : i32 to index
      %c0_31 = arith.constant 0 : index
      %49 = vector.load %47[%48, %c0_31] : memref<128x128xbf16, #tpu.memory_space<vmem>>, vector<128x128xbf16>
      %50 = arith.extf %49 : vector<128x128xbf16> to vector<128x128xf32>
      %cst = arith.constant dense<0.000000e+00> : vector<128x128xf32>
      %51 = tpu.matmul %7, %45, %cst {dimension_numbers = #tpu.dot_dimension_numbers<[1], [0], [0], [1], [0, 0, 1, 1], [], []>} : vector<128x128xbf16>, vector<128x128xbf16>, vector<128x128xf32> -> vector<128x128xf32>
      %52 = arith.addf %51, %50 : vector<128x128xf32>
      %53 = arith.truncf %52 : vector<128x128xf32> to vector<128x128xbf16>
      %cst_32 = arith.constant dense<0.000000e+00> : vector<128x128xf32>
      %54 = tpu.matmul %53, %9, %cst_32 {dimension_numbers = #tpu.dot_dimension_numbers<[1], [0], [0], [1], [0, 0, 1, 1], [], []>} : vector<128x128xbf16>, vector<128x128xbf16>, vector<128x128xf32> -> vector<128x128xf32>
      %55 = vector.broadcast %14 : vector<1x128xf32> to vector<128x128xf32>
      %56 = arith.addf %54, %55 : vector<128x128xf32>
      %cst_33 = arith.constant 0.000000e+00 : f32
      %57 = vector.broadcast %cst_33 : f32 to vector<128x128xf32>
      %58 = arith.maximumf %56, %57 : vector<128x128xf32>
      %59 = arith.truncf %58 : vector<128x128xf32> to vector<128x128xbf16>
      %cst_34 = arith.constant dense<0.000000e+00> : vector<128x128xf32>
      %60 = tpu.matmul %59, %11, %cst_34 {dimension_numbers = #tpu.dot_dimension_numbers<[1], [0], [0], [1], [0, 0, 1, 1], [], []>} : vector<128x128xbf16>, vector<128x128xbf16>, vector<128x128xf32> -> vector<128x128xf32>
      %61 = vector.broadcast %15 : vector<1x128xf32> to vector<128x128xf32>
      %62 = arith.addf %60, %61 : vector<128x128xf32>
      %cst_35 = arith.constant 0.000000e+00 : f32
      %63 = vector.broadcast %cst_35 : f32 to vector<128x128xf32>
      %64 = arith.maximumf %62, %63 : vector<128x128xf32>
      %65 = vector.broadcast %16 : vector<1x128xf32> to vector<128x128xf32>
      %66 = arith.mulf %64, %65 : vector<128x128xf32>
      %67 = vector.broadcast %17 : vector<1x128xf32> to vector<128x128xf32>
      %68 = arith.addf %66, %67 : vector<128x128xf32>
      %c2_i32_36 = arith.constant 2 : i32
      %69 = arith.cmpi slt, %arg0, %c2_i32_36 : i32
      %70 = arith.extui %69 : i1 to i32
      %c0_i32_37 = arith.constant 0 : i32
      %c0_i32_38 = arith.constant 0 : i32
      %71 = arith.cmpi ne, %70, %c0_i32_38 : i32
      scf.if %71 {
        %75 = arith.truncf %68 : vector<128x128xf32> to vector<128x128xbf16>
        %c0_i32_41 = arith.constant 0 : i32
        %c0_i32_42 = arith.constant 0 : i32
        %76 = tpu.memref_slice %arg8[%c0_i32_37, %c0_i32_41, %c0_i32_42] : memref<2x128x128xbf16, #tpu.memory_space<vmem>> -> memref<1x128x128xbf16, #tpu.memory_space<vmem>>
        %77 = tpu.memref_squeeze %76 : memref<1x128x128xbf16, #tpu.memory_space<vmem>> -> memref<128x128xbf16, #tpu.memory_space<vmem>>
        %78 = arith.index_cast %1 : i32 to index
        %c0_43 = arith.constant 0 : index
        %79 = vector.load %77[%78, %c0_43] : memref<128x128xbf16, #tpu.memory_space<vmem>>, vector<128x128xbf16>
        tpu.vector_store %77[%78, %c0_43], %75 {strides = array<i32>} : memref<128x128xbf16, #tpu.memory_space<vmem>>, vector<128x128xbf16>,
      } else {
      }
      %c2_i32_39 = arith.constant 2 : i32
      %72 = arith.cmpi eq, %arg0, %c2_i32_39 : i32
      %73 = arith.extui %72 : i1 to i32
      %c0_i32_40 = arith.constant 0 : i32
      %74 = arith.cmpi ne, %73, %c0_i32_40 : i32
      scf.if %74 {
        %75 = arith.index_cast %1 : i32 to index
        %c0_41 = arith.constant 0 : index
        %76 = vector.load %arg7[%75, %c0_41] : memref<128x128xf32, #tpu.memory_space<vmem>>, vector<128x128xf32>
        tpu.vector_store %arg7[%75, %c0_41], %68 {strides = array<i32>} : memref<128x128xf32, #tpu.memory_space<vmem>>, vector<128x128xf32>,
      } else {
      }
    } else {
    }
    %c2_i32_18 = arith.constant 2 : i32
    %c0_i32_19 = arith.constant 0 : i32
    %31 = arith.cmpi eq, %c2_i32_18, %c0_i32_19 : i32
    %c1_i32_20 = arith.constant 1 : i32
    %32 = arith.select %31, %c1_i32_20, %c2_i32_18 : i32
    %33 = arith.remsi %arg0, %32 : i32
    %c0_i32_21 = arith.constant 0 : i32
    %34 = arith.cmpi ne, %33, %c0_i32_21 : i32
    %c0_i32_22 = arith.constant 0 : i32
    %35 = arith.cmpi slt, %33, %c0_i32_22 : i32
    %c0_i32_23 = arith.constant 0 : i32
    %36 = arith.cmpi slt, %32, %c0_i32_23 : i32
    %37 = arith.xori %35, %36 : i1
    %38 = arith.andi %37, %34 : i1
    %39 = arith.addi %33, %32 : i32
    %40 = arith.select %38, %39, %33 : i32
    %c1_i32_24 = arith.constant 1 : i32
    %41 = arith.cmpi eq, %40, %c1_i32_24 : i32
    %42 = arith.extui %41 : i1 to i32
    %c0_i32_25 = arith.constant 0 : i32
    %43 = arith.cmpi ne, %42, %c0_i32_25 : i32
    scf.if %43 {
      %c0_26 = arith.constant 0 : index
      %c0_27 = arith.constant 0 : index
      %c0_28 = arith.constant 0 : index
      %44 = vector.load %arg8[%c0_26, %c0_27, %c0_28] : memref<2x128x128xbf16, #tpu.memory_space<vmem>>, vector<1x128x128xbf16>
      %45 = vector.shape_cast %44 : vector<1x128x128xbf16> to vector<128x128xbf16>
      %c0_i32_29 = arith.constant 0 : i32
      %c0_i32_30 = arith.constant 0 : i32
      %c0_i32_31 = arith.constant 0 : i32
      %46 = tpu.memref_slice %arg8[%c0_i32_29, %c0_i32_30, %c0_i32_31] : memref<2x128x128xbf16, #tpu.memory_space<vmem>> -> memref<1x128x128xbf16, #tpu.memory_space<vmem>>
      %47 = tpu.memref_squeeze %46 : memref<1x128x128xbf16, #tpu.memory_space<vmem>> -> memref<128x128xbf16, #tpu.memory_space<vmem>>
      %48 = arith.index_cast %1 : i32 to index
      %c0_32 = arith.constant 0 : index
      %49 = vector.load %47[%48, %c0_32] : memref<128x128xbf16, #tpu.memory_space<vmem>>, vector<128x128xbf16>
      %50 = arith.extf %49 : vector<128x128xbf16> to vector<128x128xf32>
      %cst = arith.constant dense<0.000000e+00> : vector<128x128xf32>
      %51 = tpu.matmul %7, %45, %cst {dimension_numbers = #tpu.dot_dimension_numbers<[1], [0], [0], [1], [0, 0, 1, 1], [], []>} : vector<128x128xbf16>, vector<128x128xbf16>, vector<128x128xf32> -> vector<128x128xf32>
      %52 = arith.addf %51, %50 : vector<128x128xf32>
      %53 = arith.truncf %52 : vector<128x128xf32> to vector<128x128xbf16>
      %cst_33 = arith.constant dense<0.000000e+00> : vector<128x128xf32>
      %54 = tpu.matmul %53, %9, %cst_33 {dimension_numbers = #tpu.dot_dimension_numbers<[1], [0], [0], [1], [0, 0, 1, 1], [], []>} : vector<128x128xbf16>, vector<128x128xbf16>, vector<128x128xf32> -> vector<128x128xf32>
      %55 = vector.broadcast %14 : vector<1x128xf32> to vector<128x128xf32>
      %56 = arith.addf %54, %55 : vector<128x128xf32>
      %cst_34 = arith.constant 0.000000e+00 : f32
      %57 = vector.broadcast %cst_34 : f32 to vector<128x128xf32>
      %58 = arith.maximumf %56, %57 : vector<128x128xf32>
      %59 = arith.truncf %58 : vector<128x128xf32> to vector<128x128xbf16>
      %cst_35 = arith.constant dense<0.000000e+00> : vector<128x128xf32>
      %60 = tpu.matmul %59, %11, %cst_35 {dimension_numbers = #tpu.dot_dimension_numbers<[1], [0], [0], [1], [0, 0, 1, 1], [], []>} : vector<128x128xbf16>, vector<128x128xbf16>, vector<128x128xf32> -> vector<128x128xf32>
      %61 = vector.broadcast %15 : vector<1x128xf32> to vector<128x128xf32>
      %62 = arith.addf %60, %61 : vector<128x128xf32>
      %cst_36 = arith.constant 0.000000e+00 : f32
      %63 = vector.broadcast %cst_36 : f32 to vector<128x128xf32>
      %64 = arith.maximumf %62, %63 : vector<128x128xf32>
      %65 = vector.broadcast %16 : vector<1x128xf32> to vector<128x128xf32>
      %66 = arith.mulf %64, %65 : vector<128x128xf32>
      %67 = vector.broadcast %17 : vector<1x128xf32> to vector<128x128xf32>
      %68 = arith.addf %66, %67 : vector<128x128xf32>
      %c2_i32_37 = arith.constant 2 : i32
      %69 = arith.cmpi slt, %arg0, %c2_i32_37 : i32
      %70 = arith.extui %69 : i1 to i32
      %c1_i32_38 = arith.constant 1 : i32
      %c0_i32_39 = arith.constant 0 : i32
      %71 = arith.cmpi ne, %70, %c0_i32_39 : i32
      scf.if %71 {
        %75 = arith.truncf %68 : vector<128x128xf32> to vector<128x128xbf16>
        %c0_i32_42 = arith.constant 0 : i32
        %c0_i32_43 = arith.constant 0 : i32
        %76 = tpu.memref_slice %arg8[%c1_i32_38, %c0_i32_42, %c0_i32_43] : memref<2x128x128xbf16, #tpu.memory_space<vmem>> -> memref<1x128x128xbf16, #tpu.memory_space<vmem>>
        %77 = tpu.memref_squeeze %76 : memref<1x128x128xbf16, #tpu.memory_space<vmem>> -> memref<128x128xbf16, #tpu.memory_space<vmem>>
        %78 = arith.index_cast %1 : i32 to index
        %c0_44 = arith.constant 0 : index
        %79 = vector.load %77[%78, %c0_44] : memref<128x128xbf16, #tpu.memory_space<vmem>>, vector<128x128xbf16>
        tpu.vector_store %77[%78, %c0_44], %75 {strides = array<i32>} : memref<128x128xbf16, #tpu.memory_space<vmem>>, vector<128x128xbf16>,
      } else {
      }
      %c2_i32_40 = arith.constant 2 : i32
      %72 = arith.cmpi eq, %arg0, %c2_i32_40 : i32
      %73 = arith.extui %72 : i1 to i32
      %c0_i32_41 = arith.constant 0 : i32
      %74 = arith.cmpi ne, %73, %c0_i32_41 : i32
      scf.if %74 {
        %75 = arith.index_cast %1 : i32 to index
        %c0_42 = arith.constant 0 : index
        %76 = vector.load %arg7[%75, %c0_42] : memref<128x128xf32, #tpu.memory_space<vmem>>, vector<128x128xf32>
        tpu.vector_store %arg7[%75, %c0_42], %68 {strides = array<i32>} : memref<128x128xf32, #tpu.memory_space<vmem>>, vector<128x128xf32>,
      } else {
      }
    } else {
    }
    return
  }
  func.func @transform_0(%arg0: i32, %arg1: i32) -> (i32, i32) {
    %c0_i32 = arith.constant 0 : i32
    %c0_i32_0 = arith.constant 0 : i32
    return %arg1, %c0_i32 : i32, i32
  }
  func.func @transform_1(%arg0: i32, %arg1: i32) -> (i32, i32) {
    %c0_i32 = arith.constant 0 : i32
    %c0_i32_0 = arith.constant 0 : i32
    %c0_i32_1 = arith.constant 0 : i32
    return %c0_i32, %c0_i32_0 : i32, i32
  }
  func.func @transform_2(%arg0: i32, %arg1: i32) -> (i32, i32, i32) {
    %c0_i32 = arith.constant 0 : i32
    %c0_i32_0 = arith.constant 0 : i32
    %c0_i32_1 = arith.constant 0 : i32
    return %arg0, %c0_i32, %c0_i32_0 : i32, i32, i32
  }
  func.func @transform_3(%arg0: i32, %arg1: i32) -> (i32, i32, i32) {
    %c0_i32 = arith.constant 0 : i32
    %c0_i32_0 = arith.constant 0 : i32
    %c0_i32_1 = arith.constant 0 : i32
    return %arg0, %c0_i32, %c0_i32_0 : i32, i32, i32
  }
  func.func @transform_4(%arg0: i32, %arg1: i32) -> (i32, i32, i32) {
    %c0_i32 = arith.constant 0 : i32
    %c0_i32_0 = arith.constant 0 : i32
    %c0_i32_1 = arith.constant 0 : i32
    return %arg0, %c0_i32, %c0_i32_0 : i32, i32, i32
  }
  func.func @transform_5(%arg0: i32, %arg1: i32) -> (i32, i32) {
    %c0_i32 = arith.constant 0 : i32
    %c0_i32_0 = arith.constant 0 : i32
    %c0_i32_1 = arith.constant 0 : i32
    return %c0_i32, %c0_i32_0 : i32, i32
  }
}

</mosaic_0001>

<bundles_post_ra>
// kernel: gin_forward.1
= control target key start
LH: loop header
LB: loop body
LE: loop exit
PB: predicated region body
PF: predicated region fallthrough
CT: control target
= control target key end

     0   :  { %10 = vsyncpa [#allocation4], 0  ;;  %s3223_s0 = inlined_call_operand.vmem [shape: bf16[128,128], index: 0, kind: input, shape index: {}]   ;;  %s3224_s1 = inlined_call_operand.vmem [shape: bf16[128,128], index: 1, kind: input, shape index: {}]   ;;  %s3225_s2 = inlined_call_operand.vmem [shape: bf16[3,128,128], index: 2, kind: input, shape index: {}]   ;;  %s3226_s3 = inlined_call_operand.hbm [shape: bf16[3,128,128], index: 3, kind: input, shape index: {}]   ;;  %s3227_s4 = inlined_call_operand.vmem [shape: f32[3,4,128], index: 4, kind: input, shape index: {}]   ;;  %s3228_s5 = inlined_call_operand.vmem [shape: f32[128,128], index: 5, kind: output, shape index: {}]  }
   0x1   :  { %12 = vsyncpa [#allocation4 + $0x1], 0  ;;  %s2355_s18 = smov 0   ;;  %s2357_s19 = smov 0  }
   0x2   :  { %s2359_s20 = smov 0   ;;  %s2361_s21 = smov 0  }
   0x3   :  { %s2363_s22 = smov 0   ;;  %s2365_s23 = smov 0  }
   0x4 LB: > { %s1583_s24 = sadd.s32 4294967295, %s2321_s23   ;;  %s30_s25 = sadd.s32 1, %s2317_s22  ;;  %s2321_s23 = sphi %s2365_s23, %s18_s23   ;;  %s2317_s22 = sphi %s2363_s22, %s3317_s22   ;;  %s2313_s21 = sphi %s2361_s21, %s3316_s21   ;;  %s2309_s20 = sphi %s2359_s20, %s3315_s20   ;;  %s2305_s19 = sphi %s2357_s19, %s3314_s19   ;;  %s2301_s18 = sphi %s2355_s18, %s3313_s18  }
   0x5   : > { %p32_p0 = scmp.ge.s32.totalorder %s30_s25, 3  ;;  %s110_s26 = sadd.s32 1, %s2309_s20 }
   0x6   : > { %p117_p1 = scmp.ne.s32.totalorder %s2309_s20, %s2305_s19  ;;  %p118_p2 = scmp.eq.s32.totalorder %s2321_s23, 0 }
   0x7   : > { %s3319_s25 = smov (%p32_p0, %s30_s25), 0  ;;  %p123_p4 = scmp.ne.s32.totalorder %s2305_s19, %s2301_s18 }
   0x8   : > { %p2391_p3 = por %p118_p2, %p117_p1  ;;  %s107_s28 = ssub.s32 %s2317_s22, %s3319_s25 }
   0x9   : > { %p124_p5 = scmp.eq.s32.totalorder %s1583_s24, 0  ;;  %p108_p6 = scmp.eq.s32.totalorder %s107_s28, 0 }
   0xa   : > { %p2190_p8 = scmp.lt.s32.totalorder %s2321_s23, 3  ;;  %s214_s6 = sand.u32 1, %s2309_s20  }
   0xb   : > { %p2398_p7 = por %p124_p5, %p123_p4  ;;  %s1895_s7 = sshll.u32 %s2317_s22, 6 }
   0xc   : > { %s2404_s30 = scalar_select %p108_p6, %s2309_s20, %s110_s26  }
   0xd   : > { %s1587_s8 = sshll.u32 %s214_s6, 6  ;;  %s223_s11 = scalar_lea.hbm %s3226_s3, %s1895_s7 }
   0xe   : > { %s224_s12 = sshll.u32 %s223_s11, 4  ;;  %s218_s13 = scalar_lea.vmem [#allocation3], %s1587_s8  ;;  %s225_s12 = int_to_ptr.hbm [resolvable:$true] %s224_s12 }
   0xf   : > { %s226_s14 = sshll.u32 %s218_s13, 4  ;;  %p2187_p9 = pnand %p2190_p8, %p2391_p3  ;;  %s227_s14 = int_to_ptr.vmem [resolvable:$true] %s226_s14 }
  0x10   : > { %p1590_p10 = scmp.ge.s32.totalorder %s2321_s23, 1  ;;  %p241_p11 = scmp.lt.s32.totalorder %s2321_s23, 4 }
  0x11   : > { %s215_s15 = scalar_lea.sflag [#allocation4], %s214_s6  ;;  %s2323_s16 = smov 64  }
  0x12   : > { %s2324_s17 = smov 4   ;;  %p242_p12 = pnand %p1590_p10, %p241_p11 }
  0x13   : > { %2189 = dma.hbm_to_vmem [thread:$0]  (!%p2187_p9), %s225_s12, 1024, %s227_s14, %s215_s15, %s2323_s16, %s2323_s16, %s2324_s17  }
  0x14   : > { %245 = sbr.rel (%p242_p12) target bundleno = 1232 (0x4d0), region = 40 }
  0x19   : > { %s247_s18 = sand.u32 1, %s2305_s19  }
  0x1a   : > { %s1591_s24 = sshll.u32 %s247_s18, 6  ;;  %s248_s26 = scalar_lea.sflag [#allocation4], %s247_s18 }
  0x1b   : > { %s2416_s28 = scalar_lea.vmem [#allocation3], %s1591_s24 }
  0x1c   : > { %2296 = dma.done.wait (%p2398_p7), %s248_s26, 1024  }
  0x1d   : > { %2298 = vsyncadd (%p2398_p7), %s248_s26, 4294966272  ;;  %p294_p13 = scmp.lt.s32.totalorder %s2313_s21, 2  ;;  %p304_p0 = scmp.eq.s32.totalorder %s2313_s21, 0 }
  0x1e   : > { %v310_v0 = vld [vmem:[%s3224_s1] sm:$0xff] (%p304_p0)   ;;  %v312_v1 = vld [vmem:[%s3224_s1 + $0x8] sm:$0xff] (%p304_p0)   ;;  %v314_v2 = vld [vmem:[%s3224_s1 + $0x10] sm:$0xff] (%p304_p0)  }
  0x1f   : > { %s295_s27 = scalar_select %p294_p13, %s2313_s21, 2  ;;  %327 = vst [vmem:[#allocation2 + $0x40] sm:$0xff] (%p304_p0), %v310_v0   ;;  %v316_v3 = vld [vmem:[%s3224_s1 + $0x18] sm:$0xff] (%p304_p0)   ;;  %v318_v4 = vld [vmem:[%s3224_s1 + $0x20] sm:$0xff] (%p304_p0)   ;;  %v320_v5 = vld [vmem:[%s3224_s1 + $0x28] sm:$0xff] (%p304_p0)  }
  0x20   : > { %309 = sbr.rel (!%p304_p0) target bundleno = 39 (0x27), region = 48  ;;  %329 = vst [vmem:[#allocation2 + $0x48] sm:$0xff] (%p304_p0), %v312_v1   ;;  %v322_v6 = vld [vmem:[%s3224_s1 + $0x30] sm:$0xff] (%p304_p0)   ;;  %v324_v7 = vld [vmem:[%s3224_s1 + $0x38] sm:$0xff] (%p304_p0)  }
  0x21   : > { %s1896_s6 = sshll.u32 %s295_s27, 6  ;;  %s1594_s7 = sshll.u32 %s295_s27, 2  ;;  %331 = vst [vmem:[#allocation2 + $0x50] sm:$0xff] (%p304_p0), %v314_v2  }
  0x22   : > { %s2428_s10 = scalar_lea.vmem %s3225_s2, %s1896_s6  ;;  %s2433_s13 = scalar_lea.vmem %s3227_s4, %s1594_s7  ;;  %333 = vst [vmem:[#allocation2 + $0x58] sm:$0xff] (%p304_p0), %v316_v3  }
  0x23   : > { %335 = vst [vmem:[#allocation2 + $0x60] sm:$0xff] (%p304_p0), %v318_v4  }
  0x24   : > { %337 = vst [vmem:[#allocation2 + $0x68] sm:$0xff] (%p304_p0), %v320_v5  }
  0x25   : > { %339 = vst [vmem:[#allocation2 + $0x70] sm:$0xff] %v322_v6  }
  0x26   : > { %341 = vst [vmem:[#allocation2 + $0x78] sm:$0xff] %v324_v7  }
  0x27 PF: > { %v2462_v8 = vld [vmem:[%s3223_s0] sm:$0xf]  ;;  %v2472_v10 = vld [vmem:[%s3223_s0] sm:$0xf0]  ;;  %v2482_v12 = vld [vmem:[%s3223_s0 + $0x8] sm:$0xf] }
  0x28   : > { %v2467_v9 = vld [vmem:[%s3223_s0] sm:$0xf]  ;;  %v2477_v11 = vld [vmem:[%s3223_s0] sm:$0xf0]  ;;  %v2487_v13 = vld [vmem:[%s3223_s0 + $0x8] sm:$0xf] }
  0x29   : > { %v2492_v14 = vld [vmem:[%s3223_s0 + $0x8] sm:$0xf0]  ;;  %v2502_v16 = vld [vmem:[%s3223_s0 + $0x10] sm:$0xf]  ;;  %v2512_v18 = vld [vmem:[%s3223_s0 + $0x10] sm:$0xf0] }
  0x2a   : > { %v2497_v15 = vld [vmem:[%s3223_s0 + $0x8] sm:$0xf0]  ;;  %3231 = vst [vmem:[#allocation6_spill] sm:$0xff] %v2502_v16  ;;  %v2507_v17 = vld [vmem:[%s3223_s0 + $0x10] sm:$0xf]  ;;  %p392_p1 = scmp.lt.s32.totalorder %s2313_s21, 0 }
  0x2b   : > { %3232 = vst [vmem:[#allocation7_spill] sm:$0xff] %v2512_v18  ;;  %v2517_v19 = vld [vmem:[%s3223_s0 + $0x10] sm:$0xf0]  ;;  %v2522_v20 = vld [vmem:[%s3223_s0 + $0x18] sm:$0xf] }
  0x2c   : > { %3233 = vst [vmem:[#allocation8_spill] sm:$0xff] %v2522_v20  ;;  %v2527_v21 = vld [vmem:[%s3223_s0 + $0x18] sm:$0xf]  ;;  %v2532_v22 = vld [vmem:[%s3223_s0 + $0x18] sm:$0xf0] }
  0x2d   : > { %3234 = vst [vmem:[#allocation9_spill] sm:$0xff] %v2532_v22  ;;  %v2537_v23 = vld [vmem:[%s3223_s0 + $0x18] sm:$0xf0]  ;;  %v2542_v24 = vld [vmem:[%s3223_s0 + $0x20] sm:$0xf] }
  0x2e   : > { %3235 = vst [vmem:[#allocation10_spill] sm:$0xff] %v2542_v24  ;;  %v2547_v25 = vld [vmem:[%s3223_s0 + $0x20] sm:$0xf]  ;;  %v2552_v26 = vld [vmem:[%s3223_s0 + $0x20] sm:$0xf0] }
  0x2f   : > { %3236 = vst [vmem:[#allocation11_spill] sm:$0xff] %v2552_v26  ;;  %v2557_v27 = vld [vmem:[%s3223_s0 + $0x20] sm:$0xf0]  ;;  %v2562_v28 = vld [vmem:[%s3223_s0 + $0x28] sm:$0xf] }
  0x30   : > { %3237 = vst [vmem:[#allocation12_spill] sm:$0xff] %v2562_v28  ;;  %v2567_v29 = vld [vmem:[%s3223_s0 + $0x28] sm:$0xf]  ;;  %v2572_v30 = vld [vmem:[%s3223_s0 + $0x28] sm:$0xf0] }
  0x31   : > { %3238 = vst [vmem:[#allocation13_spill] sm:$0xff] %v2572_v30  ;;  %v2577_v31 = vld [vmem:[%s3223_s0 + $0x28] sm:$0xf0]  ;;  %v2582_v32 = vld [vmem:[%s3223_s0 + $0x30] sm:$0xf] }
  0x32   : > { %v2587_v33 = vld [vmem:[%s3223_s0 + $0x30] sm:$0xf]  ;;  %v2592_v34 = vld [vmem:[%s3223_s0 + $0x30] sm:$0xf0]  ;;  %v2602_v36 = vld [vmem:[%s3223_s0 + $0x38] sm:$0xf] }
  0x33   : > { %v2597_v35 = vld [vmem:[%s3223_s0 + $0x30] sm:$0xf0]  ;;  %v2607_v37 = vld [vmem:[%s3223_s0 + $0x38] sm:$0xf]  ;;  %v2612_v38 = vld [vmem:[%s3223_s0 + $0x38] sm:$0xf0] }
  0x34   : > { %3239 = vst [vmem:[#allocation14_spill] sm:$0xff] %v2612_v38  ;;  %v2617_v39 = vld [vmem:[%s3223_s0 + $0x38] sm:$0xf0]  ;;  %v2620_v40 = vld [vmem:[%s2428_s10] sm:$0xf] }
  0x35   : > { %3240 = vst [vmem:[#allocation15_spill] sm:$0xff] %v2620_v40  ;;  %v2623_v41 = vld [vmem:[%s2428_s10] sm:$0xf]  ;;  %v2626_v42 = vld [vmem:[%s2428_s10] sm:$0xf0] }
  0x36   : > { %3241 = vst [vmem:[#allocation16_spill] sm:$0xff] %v2626_v42  ;;  %v2629_v43 = vld [vmem:[%s2428_s10] sm:$0xf0]  ;;  %v2632_v44 = vld [vmem:[%s2428_s10 + $0x8] sm:$0xf] }
  0x37   : > { %3242 = vst [vmem:[#allocation17_spill] sm:$0xff] %v2632_v44  ;;  %v2635_v45 = vld [vmem:[%s2428_s10 + $0x8] sm:$0xf]  ;;  %v2638_v46 = vld [vmem:[%s2428_s10 + $0x8] sm:$0xf0] }
  0x38   : > { %3243 = vst [vmem:[#allocation18_spill] sm:$0xff] %v2638_v46  ;;  %v2641_v47 = vld [vmem:[%s2428_s10 + $0x8] sm:$0xf0]  ;;  %v2644_v48 = vld [vmem:[%s2428_s10 + $0x10] sm:$0xf] }
  0x39   : > { %3244 = vst [vmem:[#allocation19_spill] sm:$0xff] %v2644_v48  ;;  %v2647_v49 = vld [vmem:[%s2428_s10 + $0x10] sm:$0xf]  ;;  %v2650_v50 = vld [vmem:[%s2428_s10 + $0x10] sm:$0xf0] }
  0x3a   : > { %3245 = vst [vmem:[#allocation20_spill] sm:$0xff] %v2650_v50  ;;  %v2653_v51 = vld [vmem:[%s2428_s10 + $0x10] sm:$0xf0]  ;;  %v2656_v52 = vld [vmem:[%s2428_s10 + $0x18] sm:$0xf] }
  0x3b   : > { %3246 = vst [vmem:[#allocation21_spill] sm:$0xff] %v2656_v52  ;;  %v2659_v53 = vld [vmem:[%s2428_s10 + $0x18] sm:$0xf]  ;;  %v2662_v54 = vld [vmem:[%s2428_s10 + $0x18] sm:$0xf0] }
  0x3c   : > { %3247 = vst [vmem:[#allocation22_spill] sm:$0xff] %v2662_v54  ;;  %v2665_v55 = vld [vmem:[%s2428_s10 + $0x18] sm:$0xf0]  ;;  %v2668_v56 = vld [vmem:[%s2428_s10 + $0x20] sm:$0xf] }
  0x3d   : > { %3248 = vst [vmem:[#allocation23_spill] sm:$0xff] %v2668_v56  ;;  %v2671_v57 = vld [vmem:[%s2428_s10 + $0x20] sm:$0xf]  ;;  %v2674_v58 = vld [vmem:[%s2428_s10 + $0x20] sm:$0xf0] }
  0x3e   : > { %3249 = vst [vmem:[#allocation24_spill] sm:$0xff] %v2674_v58  ;;  %v2677_v59 = vld [vmem:[%s2428_s10 + $0x20] sm:$0xf0]  ;;  %v2680_v60 = vld [vmem:[%s2428_s10 + $0x28] sm:$0xf] }
  0x3f   : > { %3250 = vst [vmem:[#allocation25_spill] sm:$0xff] %v2680_v60  ;;  %v2683_v61 = vld [vmem:[%s2428_s10 + $0x28] sm:$0xf]  ;;  %v2686_v62 = vld [vmem:[%s2428_s10 + $0x28] sm:$0xf0] }
  0x40   : > { %3251 = vst [vmem:[#allocation26_spill] sm:$0xff] %v2686_v62  ;;  %v2689_v63 = vld [vmem:[%s2428_s10 + $0x28] sm:$0xf0]  ;;  %v2692_v0 = vld [vmem:[%s2428_s10 + $0x30] sm:$0xf] }
  0x41   : > { %3252 = vst [vmem:[#allocation27_spill] sm:$0xff] %v2692_v0  ;;  %v2695_v1 = vld [vmem:[%s2428_s10 + $0x30] sm:$0xf]  ;;  %v2698_v2 = vld [vmem:[%s2428_s10 + $0x30] sm:$0xf0] }
  0x42   : > { %3253 = vst [vmem:[#allocation28_spill] sm:$0xff] %v2698_v2  ;;  %v2701_v3 = vld [vmem:[%s2428_s10 + $0x30] sm:$0xf0]  ;;  %v2704_v4 = vld [vmem:[%s2428_s10 + $0x38] sm:$0xf] }
  0x43   : > { %3254 = vst [vmem:[#allocation29_spill] sm:$0xff] %v2704_v4  ;;  %v2707_v5 = vld [vmem:[%s2428_s10 + $0x38] sm:$0xf]  ;;  %v2710_v6 = vld [vmem:[%s2428_s10 + $0x38] sm:$0xf0] }
  0x44   : > { %3255 = vst [vmem:[#allocation30_spill] sm:$0xff] %v2710_v6  ;;  %v2713_v7 = vld [vmem:[%s2428_s10 + $0x38] sm:$0xf0]  ;;  %v2716_v42 = vld [vmem:[%s2416_s28] sm:$0xf]  ;;  %s393_s10 = ssub.s32 0, %s2313_s21 }
  0x45   : > { %3256 = vst [vmem:[#allocation31_spill] sm:$0xff] %v2716_v42  ;;  %v2719_v40 = vld [vmem:[%s2416_s28] sm:$0xf]  ;;  %v2722_v46 = vld [vmem:[%s2416_s28] sm:$0xf0]  ;;  %s1596_s18 = smin.u32 %s2313_s21, %s393_s10 }
  0x46   : > { %3257 = vst [vmem:[#allocation32_spill] sm:$0xff] %v2722_v46  ;;  %v2725_v44 = vld [vmem:[%s2416_s28] sm:$0xf0]  ;;  %v2728_v50 = vld [vmem:[%s2416_s28 + $0x8] sm:$0xf]  ;;  %s395_s24 = sand.u32 1, %s1596_s18  }
  0x47   : > { %3258 = vst [vmem:[#allocation33_spill] sm:$0xff] %v2728_v50  ;;  %v2731_v48 = vld [vmem:[%s2416_s28 + $0x8] sm:$0xf]  ;;  %v2734_v30 = vld [vmem:[%s2416_s28 + $0x8] sm:$0xf0]  ;;  %s396_s26 = ssub.s32 0, %s395_s24 }
  0x48   : > { %3259 = vst [vmem:[#allocation34_spill] sm:$0xff] %v2734_v30  ;;  %v2737_v42 = vld [vmem:[%s2416_s28 + $0x8] sm:$0xf0]  ;;  %v2740_v28 = vld [vmem:[%s2416_s28 + $0x10] sm:$0xf]  ;;  %s3321_s26 = smov (!%p392_p1, %s396_s26), %s395_s24 }
  0x49   : > { %3260 = vst [vmem:[#allocation35_spill] sm:$0xff] %v2740_v28  ;;  %v2743_v46 = vld [vmem:[%s2416_s28 + $0x10] sm:$0xf]  ;;  %v2746_v54 = vld [vmem:[%s2416_s28 + $0x10] sm:$0xf0]  ;;  %p1598_p2 = scmp.lt.s32.totalorder %s3321_s26, 0 }
  0x4a   : > { %3261 = vst [vmem:[#allocation36_spill] sm:$0xff] %v2746_v54  ;;  %v2749_v50 = vld [vmem:[%s2416_s28 + $0x10] sm:$0xf0]  ;;  %v2752_v52 = vld [vmem:[%s2416_s28 + $0x18] sm:$0xf]  ;;  %s402_s27 = sadd.s32 2, %s3321_s26 }
  0x4b   : > { %3262 = vst [vmem:[#allocation37_spill] sm:$0xff] %v2752_v52  ;;  %v2755_v30 = vld [vmem:[%s2416_s28 + $0x18] sm:$0xf]  ;;  %v2758_v26 = vld [vmem:[%s2416_s28 + $0x18] sm:$0xf0]  ;;  %s3323_s27 = smov (!%p1598_p2, %s402_s27), %s3321_s26 }
  0x4c   : > { %3263 = vst [vmem:[#allocation38_spill] sm:$0xff] %v2758_v26  ;;  %v2761_v28 = vld [vmem:[%s2416_s28 + $0x18] sm:$0xf0]  ;;  %v2764_v24 = vld [vmem:[%s2416_s28 + $0x20] sm:$0xf]  ;;  %p1599_p3 = scmp.ne.s32.totalorder %s3323_s27, 0 }
  0x4d   : > { %3264 = vst [vmem:[#allocation39_spill] sm:$0xff] %v2764_v24  ;;  %v2767_v54 = vld [vmem:[%s2416_s28 + $0x20] sm:$0xf]  ;;  %v2770_v58 = vld [vmem:[%s2416_s28 + $0x20] sm:$0xf0]  ;;  %p1744_p4 = scmp.ge.s32.totalorder (!%p1599_p3), %s2313_s21, 2 }
  0x4e   : > { %3265 = vst [vmem:[#allocation40_spill] sm:$0xff] %v2770_v58  ;;  %v2773_v52 = vld [vmem:[%s2416_s28 + $0x20] sm:$0xf0]  ;;  %v2776_v56 = vld [vmem:[%s2416_s28 + $0x28] sm:$0xf] }
  0x4f   : > { %3266 = vst [vmem:[#allocation41_spill] sm:$0xff] %v2776_v56  ;;  %v2779_v62 = vld [vmem:[%s2416_s28 + $0x28] sm:$0xf]  ;;  %v2782_v26 = vld [vmem:[%s2416_s28 + $0x28] sm:$0xf0] }
  0x50   : > { %3267 = vst [vmem:[#allocation42_spill] sm:$0xff] %v2782_v26  ;;  %v2785_v60 = vld [vmem:[%s2416_s28 + $0x28] sm:$0xf0]  ;;  %v2788_v2 = vld [vmem:[%s2416_s28 + $0x30] sm:$0xf]  ;;  %407 = sbr.rel (%p1599_p3) target bundleno = 655 (0x28f), region = 52 }
  0x51   : > { %3268 = vst [vmem:[#allocation43_spill] sm:$0xff] %v2788_v2  ;;  %v2791_v24 = vld [vmem:[%s2416_s28 + $0x30] sm:$0xf]  ;;  %v2794_v0 = vld [vmem:[%s2416_s28 + $0x30] sm:$0xf0] }
  0x52   : > { %3269 = vst [vmem:[#allocation44_spill] sm:$0xff] %v2794_v0  ;;  %v2797_v6 = vld [vmem:[%s2416_s28 + $0x30] sm:$0xf0]  ;;  %v2800_v58 = vld [vmem:[%s2416_s28 + $0x38] sm:$0xf] }
  0x53   : > { %3270 = vst [vmem:[#allocation45_spill] sm:$0xff] %v2800_v58  ;;  %v2803_v4 = vld [vmem:[%s2416_s28 + $0x38] sm:$0xf]  ;;  %v2806_v22 = vld [vmem:[%s2416_s28 + $0x38] sm:$0xf0] }
  0x54   : > { %3271 = vst [vmem:[#allocation46_spill] sm:$0xff] %v2806_v22  ;;  %v2809_v56 = vld [vmem:[%s2416_s28 + $0x38] sm:$0xf0]  ;;  %v2812_v20 = vld [vmem:[%s2433_s13] sm:$0xf] }
  0x55   : > { %v1953_v26 = vld [vmem:[#allocation2 + $0x78] sm:$0xff]  ;;  %v1952_v0 = vld [vmem:[#allocation2 + $0x70] sm:$0xff]  ;;  %v1951_v2 = vld [vmem:[#allocation2 + $0x68] sm:$0xff] }
  0x56   : > { %557 = vmatpush.bf16.msra.mxu0 %v1953_v26  ;;  %2136 = vmatpush.bf16.msra.mxu3 %v1953_v26  ;;  %v1950_v22 = vld [vmem:[#allocation2 + $0x60] sm:$0xff]  ;;  %v1949_v58 = vld [vmem:[#allocation2 + $0x58] sm:$0xff]  ;;  %v1948_v18 = vld [vmem:[#allocation2 + $0x50] sm:$0xff]  ;;  %v1619_v26 = vor.u32 %v2477_v11, %v2467_v9  ;;  %v1631_v9 = vor.u32 %v2537_v23, %v2527_v21  ;;  %v1711_v11 = vor.u32 %v2713_v7, %v2707_v5 }
  0x57   : > { %v1947_v16 = vld [vmem:[#allocation2 + $0x48] sm:$0xff]  ;;  %v1946_v38 = vld [vmem:[#allocation2 + $0x40] sm:$0xff]  ;;  %v1639_v21 = vor.u32 %v2577_v31, %v2567_v29  ;;  %v1691_v23 = vor.u32 %v2653_v51, %v2647_v49  ;;  %v2112_v31 = vld [vmem:[#allocation2 + $0x70] sm:$0xff]  }
  0x58   : > { %663 = vmatpush.bf16.msra.mxu1 %v1711_v11 }
  0x5a   : > { %558 = vmatpush.bf16.msra.mxu0 %v1952_v0  ;;  %2137 = vmatpush.bf16.msra.mxu3 %v1952_v0  ;;  %v1643_v0 = vor.u32 %v2597_v35, %v2587_v33  ;;  %v1687_v33 = vor.u32 %v2641_v47, %v2635_v45  ;;  %v2106_v35 = vld [vmem:[#allocation2 + $0x40] sm:$0xff]   ;;  %v1989_v45 = vunpack.c.h.bf16 %v2112_v31 }
  0x5b   : > { %v1965_v29 = vunpack.c.h.bf16 %v2106_v35 }
  0x5e   : > { %559 = vmatpush.bf16.msra.mxu0 %v1951_v2  ;;  %2138 = vmatpush.bf16.msra.mxu3 %v1951_v2  ;;  %v2113_v2 = vld [vmem:[#allocation2 + $0x78] sm:$0xff]  }
  0x62   : > { %560 = vmatpush.bf16.msra.mxu0 %v1950_v22  ;;  %2139 = vmatpush.bf16.msra.mxu3 %v1950_v22  ;;  %v1623_v22 = vor.u32 %v2497_v15, %v2487_v13  ;;  %v1707_v13 = vor.u32 %v2701_v3, %v2695_v1  ;;  %v1703_v15 = vor.u32 %v2689_v63, %v2683_v61 }
  0x64   : > { %664 = vmatpush.bf16.msra.mxu1 %v1707_v13 }
  0x66   : > { %561 = vmatpush.bf16.msra.mxu0 %v1949_v58  ;;  %2140 = vmatpush.bf16.msra.mxu3 %v1949_v58  ;;  %v1647_v58 = vor.u32 %v2617_v39, %v2607_v37  ;;  %v1964_v37 = vunpack.c.l.bf16 %v2106_v35  ;;  %v2109_v35 = vld [vmem:[#allocation2 + $0x58] sm:$0xff]  }
  0x68   : > { %665 = vmatpush.bf16.msra.mxu1 %v1703_v15 }
  0x6a   : > { %562 = vmatpush.bf16.msra.mxu0 %v1948_v18  ;;  %2141 = vmatpush.bf16.msra.mxu3 %v1948_v18  ;;  %v1635_v18 = vor.u32 %v2557_v27, %v2547_v25  ;;  %v1683_v25 = vor.u32 %v2629_v43, %v2623_v41  ;;  %v2107_v43 = vld [vmem:[#allocation2 + $0x48] sm:$0xff]  }
  0x6b   : > { %v1968_v63 = vunpack.c.l.bf16 %v2107_v43  ;;  %v1969_v1 = vunpack.c.h.bf16 %v2107_v43 }
  0x6e   : > { %563 = vmatpush.bf16.msra.mxu0 %v1947_v16  ;;  %2142 = vmatpush.bf16.msra.mxu3 %v1947_v16  ;;  %v1627_v16 = vor.u32 %v2517_v19, %v2507_v17  ;;  %v1699_v17 = vor.u32 %v2677_v59, %v2671_v57  ;;  %v1695_v19 = vor.u32 %v2665_v55, %v2659_v53  ;;  %v1988_v53 = vunpack.c.l.bf16 %v2112_v31 }
  0x70   : > { %666 = vmatpush.bf16.msra.mxu1 %v1699_v17 }
  0x72   : > { %564 = vmatpush.bf16.msra.mxu0 %v1946_v38  ;;  %2143 = vmatpush.bf16.msra.mxu3 %v1946_v38 }
  0x74   : > { %667 = vmatpush.bf16.msra.mxu1 %v1695_v19 }
  0x75   : > { %565 = vmatmul.bf16.vlgmr.msra.gmra.mxu0 %v1619_v26  ;;  %595 = vmatmul.bf16.vlgmr.msra.gmra.mxu3 %v1643_v0  ;;  %v1992_v0 = vunpack.c.l.bf16 %v2113_v2 }
  0x76   : > { %2144 = vmatpush.bf16.msrb.mxu3 %v1711_v11 }
  0x78   : > { %668 = vmatpush.bf16.msra.mxu1 %v1691_v23 }
  0x7a   : > { %2145 = vmatpush.bf16.msrb.mxu3 %v1707_v13 }
  0x7c   : > { %669 = vmatpush.bf16.msra.mxu1 %v1687_v33 }
  0x7e   : > { %2146 = vmatpush.bf16.msrb.mxu3 %v1703_v15 }
  0x80   : > { %670 = vmatpush.bf16.msra.mxu1 %v1683_v25 }
  0x82   : > { %2147 = vmatpush.bf16.msrb.mxu3 %v1699_v17  ;;  %v2108_v17 = vld [vmem:[#allocation2 + $0x50] sm:$0xff]  }
  0x85   : > { %570 = vmatmul.bf16.gmra.mxu0 %v1623_v22  ;;  %600 = vmatmul.bf16.gmra.mxu3 %v1647_v58  ;;  %v1993_v58 = vunpack.c.h.bf16 %v2113_v2 }
  0x86   : > { %2148 = vmatpush.bf16.msrb.mxu3 %v1695_v19  ;;  %v1973_v19 = vunpack.c.h.bf16 %v2108_v17 }
  0x8a   : > { %2149 = vmatpush.bf16.msrb.mxu3 %v1691_v23 }
  0x8e   : > { %2150 = vmatpush.bf16.msrb.mxu3 %v1687_v33 }
  0x92   : > { %2151 = vmatpush.bf16.msrb.mxu3 %v1683_v25 }
  0x95   : > { %575 = vmatmul.bf16.gmra.mxu0 %v1627_v16 }
  0xa5   : > { %580 = vmatmul.bf16.gmra.mxu0 %v1631_v9 }
  0xb5   : > { %585 = vmatmul.bf16.gmra.mxu0 %v1635_v18  ;;  %v1972_v18 = vunpack.c.l.bf16 %v2108_v17 }
  0xc5   : > { %590 = vmatmul.bf16.gmra.mxu0 %v1639_v21 }
  0xf2   : > { %v566_v27 = vpop.f32.mrf.mxu0 }
  0xf3   : > { %v567_v49 = vadd.f32 %v1964_v37, %v566_v27  ;;  %v1976_v37 = vunpack.c.l.bf16 %v2109_v35 }
  0xf8   : > { %v596_v38 = vpop.f32.mrf.mxu3 }
  0xf9   : > { %v597_v47 = vadd.f32 %v1988_v53, %v596_v38  ;;  %v1739_v53 = vor.u32 %v2797_v6, %v2791_v24  ;;  %v2111_v6 = vld [vmem:[#allocation2 + $0x68] sm:$0xff]  }
  0xfa   : > { %v568_v39 = vpop.f32.mrf.mxu0 }
  0xfb   : > { %v569_v51 = vadd.f32 %v1965_v29, %v568_v39  ;;  %v1977_v29 = vunpack.c.h.bf16 %v2109_v35 }
  0xfd   : > { %v606_v55 = vpack.c.bf16 %v569_v51, %v567_v49  ;;  %v1743_v51 = vor.u32 %v2809_v56, %v2803_v4 }
  0xff   : > { %671 = vmatmul.bf16.vlgmr.msra.gmra.mxu1 %v606_v55  ;;  %785 = vmatpush.bf16.msra.mxu2 %v1743_v51 }
 0x100   : > { %v598_v57 = vpop.f32.mrf.mxu3  ;;  %2152 = vmatpush.bf16.msra.mxu3 %v1743_v51 }
 0x101   : > { %v599_v59 = vadd.f32 %v1989_v45, %v598_v57  ;;  %v2110_v45 = vld [vmem:[#allocation2 + $0x60] sm:$0xff]  }
 0x102   : > { %v571_v61 = vpop.f32.mrf.mxu0  ;;  %v1980_v57 = vunpack.c.l.bf16 %v2110_v45 }
 0x103   : > { %v612_v41 = vpack.c.bf16 %v599_v59, %v597_v47  ;;  %v572_v7 = vadd.f32 %v1968_v63, %v571_v61  ;;  %786 = vmatpush.bf16.msra.mxu2 %v1739_v53  ;;  %v1735_v47 = vor.u32 %v2785_v60, %v2779_v62  ;;  %v1981_v59 = vunpack.c.h.bf16 %v2110_v45 }
 0x104   : > { %2153 = vmatpush.bf16.msra.mxu3 %v1739_v53  ;;  %v1731_v61 = vor.u32 %v2773_v52, %v2767_v54  ;;  %v1984_v63 = vunpack.c.l.bf16 %v2111_v6  ;;  %v1727_v52 = vor.u32 %v2761_v28, %v2755_v30  ;;  %v1723_v54 = vor.u32 %v2749_v50, %v2743_v46 }
 0x105   : > { %701 = vmatmul.bf16.vlgmr.msrb.gmra.mxu3 %v612_v41  ;;  %v614_v28 = vperm.slane %v2812_v20, 0 }
 0x107   : > { %787 = vmatpush.bf16.msra.mxu2 %v1735_v47 }
 0x108   : > { %v601_v3 = vpop.f32.mrf.mxu3  ;;  %2154 = vmatpush.bf16.msra.mxu3 %v1735_v47 }
 0x109   : > { %v602_v16 = vadd.f32 %v1992_v0, %v601_v3 }
 0x10a   : > { %v573_v5 = vpop.f32.mrf.mxu0 }
 0x10b   : > { %v574_v26 = vadd.f32 %v1969_v1, %v573_v5  ;;  %788 = vmatpush.bf16.msra.mxu2 %v1731_v61  ;;  %v1985_v1 = vunpack.c.h.bf16 %v2111_v6  ;;  %v1719_v5 = vor.u32 %v2737_v42, %v2731_v48 }
 0x10c   : > { %2155 = vmatpush.bf16.msra.mxu3 %v1731_v61 }
 0x10d   : > { %v607_v22 = vpack.c.bf16 %v574_v26, %v572_v7  ;;  %v1715_v7 = vor.u32 %v2725_v44, %v2719_v40 }
 0x10f   : > { %676 = vmatmul.bf16.gmra.mxu1 %v607_v22  ;;  %789 = vmatpush.bf16.msra.mxu2 %v1727_v52 }
 0x110   : > { %v603_v9 = vpop.f32.mrf.mxu3  ;;  %2156 = vmatpush.bf16.msra.mxu3 %v1727_v52 }
 0x111   : > { %v604_v11 = vadd.f32 %v1993_v58, %v603_v9 }
 0x112   : > { %v576_v13 = vpop.f32.mrf.mxu0 }
 0x113   : > { %v613_v15 = vpack.c.bf16 %v604_v11, %v602_v16  ;;  %v577_v23 = vadd.f32 %v1972_v18, %v576_v13  ;;  %790 = vmatpush.bf16.msra.mxu2 %v1723_v54 }
 0x114   : > { %2157 = vmatpush.bf16.msra.mxu3 %v1723_v54 }
 0x115   : > { %706 = vmatmul.bf16.gmra.mxu3 %v613_v15 }
 0x117   : > { %791 = vmatpush.bf16.msra.mxu2 %v1719_v5 }
 0x118   : > { %2158 = vmatpush.bf16.msra.mxu3 %v1719_v5 }
 0x11a   : > { %v578_v21 = vpop.f32.mrf.mxu0 }
 0x11b   : > { %v579_v33 = vadd.f32 %v1973_v19, %v578_v21  ;;  %792 = vmatpush.bf16.msra.mxu2 %v1715_v7 }
 0x11c   : > { %2159 = vmatpush.bf16.msra.mxu3 %v1715_v7 }
 0x11d   : > { %v608_v25 = vpack.c.bf16 %v579_v33, %v577_v23 }
 0x11f   : > { %681 = vmatmul.bf16.gmra.mxu1 %v608_v25 }
 0x122   : > { %v581_v27 = vpop.f32.mrf.mxu0 }
 0x123   : > { %v582_v38 = vadd.f32 %v1976_v37, %v581_v27 }
 0x12a   : > { %v583_v31 = vpop.f32.mrf.mxu0 }
 0x12b   : > { %v584_v39 = vadd.f32 %v1977_v29, %v583_v31 }
 0x12d   : > { %v609_v49 = vpack.c.bf16 %v584_v39, %v582_v38 }
 0x12f   : > { %686 = vmatmul.bf16.gmra.mxu1 %v609_v49 }
 0x132   : > { %v586_v55 = vpop.f32.mrf.mxu0 }
 0x133   : > { %v587_v4 = vadd.f32 %v1980_v57, %v586_v55 }
 0x13a   : > { %v588_v56 = vpop.f32.mrf.mxu0 }
 0x13b   : > { %v589_v41 = vadd.f32 %v1981_v59, %v588_v56 }
 0x13d   : > { %v610_v43 = vpack.c.bf16 %v589_v41, %v587_v4 }
 0x13f   : > { %691 = vmatmul.bf16.gmra.mxu1 %v610_v43 }
 0x142   : > { %v591_v24 = vpop.f32.mrf.mxu0 }
 0x143   : > { %v592_v62 = vadd.f32 %v1984_v63, %v591_v24 }
 0x14a   : > { %v593_v60 = vpop.f32.mrf.mxu0 }
 0x14b   : > { %v594_v2 = vadd.f32 %v1985_v1, %v593_v60 }
 0x14d   : > { %v611_v3 = vpack.c.bf16 %v594_v2, %v592_v62 }
 0x14f   : > { %696 = vmatmul.bf16.gmra.mxu1 %v611_v3 }
 0x17c   : > { %v672_v26 = vpop.f32.mrf.mxu1 }
 0x17d   : > { %v673_v30 = vadd.f32 %v672_v26, %v614_v28 }
 0x17f   : > { %v712_v58 = vmax.f32 %v673_v30, 0.0  ;;  %v2870_v30 = vperm.slane %v2812_v20, 1 }
 0x184   : > { %v674_v0 = vpop.f32.mrf.mxu1 }
 0x185   : > { %v675_v22 = vadd.f32 %v674_v0, %v614_v28 }
 0x187   : > { %v713_v46 = vmax.f32 %v675_v22, 0.0 }
 0x188   : > { %v702_v50 = vpop.f32.mrf.mxu3 }
 0x189   : > { %v728_v16 = vpack.c.bf16 %v713_v46, %v712_v58  ;;  %v703_v42 = vadd.f32 %v702_v50, %v614_v28  ;;  %v2874_v58 = vperm.slane %v2812_v20, 2  ;;  %v2877_v50 = vperm.slane %v2812_v20, 3 }
 0x18b   : > { %793 = vmatmul.bf16.vlgmr.msra.gmra.mxu2 %v728_v16  ;;  %v724_v11 = vmax.f32 %v703_v42, 0.0 }
 0x18c   : > { %v677_v9 = vpop.f32.mrf.mxu1 }
 0x18d   : > { %v678_v15 = vadd.f32 %v677_v9, %v614_v28 }
 0x18f   : > { %v714_v19 = vmax.f32 %v678_v15, 0.0 }
 0x190   : > { %v704_v48 = vpop.f32.mrf.mxu3 }
 0x191   : > { %v705_v13 = vadd.f32 %v704_v48, %v614_v28 }
 0x193   : > { %v725_v40 = vmax.f32 %v705_v13, 0.0 }
 0x194   : > { %v679_v44 = vpop.f32.mrf.mxu1 }
 0x195   : > { %v680_v17 = vadd.f32 %v679_v44, %v614_v28  ;;  %v734_v18 = vpack.c.bf16 %v725_v40, %v724_v11 }
 0x197   : > { %v715_v21 = vmax.f32 %v680_v17, 0.0  ;;  %823 = vmatmul.bf16.vlgmr.msra.gmra.mxu3 %v734_v18 }
 0x198   : > { %v707_v23 = vpop.f32.mrf.mxu3 }
 0x199   : > { %v729_v33 = vpack.c.bf16 %v715_v21, %v714_v19  ;;  %v708_v27 = vadd.f32 %v707_v23, %v614_v28 }
 0x19b   : > { %798 = vmatmul.bf16.gmra.mxu2 %v729_v33  ;;  %v726_v37 = vmax.f32 %v708_v27, 0.0 }
 0x19c   : > { %v682_v25 = vpop.f32.mrf.mxu1 }
 0x19d   : > { %v683_v31 = vadd.f32 %v682_v25, %v614_v28 }
 0x19f   : > { %v716_v53 = vmax.f32 %v683_v31, 0.0 }
 0x1a0   : > { %v709_v35 = vpop.f32.mrf.mxu3 }
 0x1a1   : > { %v710_v29 = vadd.f32 %v709_v35, %v614_v28 }
 0x1a3   : > { %v727_v38 = vmax.f32 %v710_v29, 0.0 }
 0x1a4   : > { %v684_v39 = vpop.f32.mrf.mxu1 }
 0x1a5   : > { %v685_v49 = vadd.f32 %v684_v39, %v614_v28  ;;  %v735_v51 = vpack.c.bf16 %v727_v38, %v726_v37 }
 0x1a7   : > { %v717_v55 = vmax.f32 %v685_v49, 0.0  ;;  %828 = vmatmul.bf16.gmra.mxu3 %v735_v51 }
 0x1a9   : > { %v730_v45 = vpack.c.bf16 %v717_v55, %v716_v53 }
 0x1ab   : > { %803 = vmatmul.bf16.gmra.mxu2 %v730_v45 }
 0x1ac   : > { %v687_v47 = vpop.f32.mrf.mxu1 }
 0x1ad   : > { %v688_v57 = vadd.f32 %v687_v47, %v614_v28 }
 0x1af   : > { %v718_v56 = vmax.f32 %v688_v57, 0.0 }
 0x1b4   : > { %v689_v59 = vpop.f32.mrf.mxu1 }
 0x1b5   : > { %v690_v61 = vadd.f32 %v689_v59, %v614_v28 }
 0x1b7   : > { %v719_v4 = vmax.f32 %v690_v61, 0.0 }
 0x1b9   : > { %v731_v41 = vpack.c.bf16 %v719_v4, %v718_v56 }
 0x1bb   : > { %808 = vmatmul.bf16.gmra.mxu2 %v731_v41 }
 0x1bc   : > { %v692_v43 = vpop.f32.mrf.mxu1 }
 0x1bd   : > { %v693_v24 = vadd.f32 %v692_v43, %v614_v28 }
 0x1bf   : > { %v720_v1 = vmax.f32 %v693_v24, 0.0 }
 0x1c4   : > { %v694_v6 = vpop.f32.mrf.mxu1 }
 0x1c5   : > { %v695_v63 = vadd.f32 %v694_v6, %v614_v28 }
 0x1c7   : > { %v721_v60 = vmax.f32 %v695_v63, 0.0 }
 0x1c9   : > { %v732_v62 = vpack.c.bf16 %v721_v60, %v720_v1 }
 0x1cb   : > { %813 = vmatmul.bf16.gmra.mxu2 %v732_v62 }
 0x1cc   : > { %v697_v2 = vpop.f32.mrf.mxu1 }
 0x1cd   : > { %v698_v3 = vadd.f32 %v697_v2, %v614_v28 }
 0x1cf   : > { %v722_v5 = vmax.f32 %v698_v3, 0.0 }
 0x1d4   : > { %v699_v52 = vpop.f32.mrf.mxu1 }
 0x1d5   : > { %v700_v54 = vadd.f32 %v699_v52, %v614_v28 }
 0x1d7   : > { %v723_v7 = vmax.f32 %v700_v54, 0.0 }
 0x1d9   : > { %v733_v26 = vpack.c.bf16 %v723_v7, %v722_v5 }
 0x1db   : > { %818 = vmatmul.bf16.gmra.mxu2 %v733_v26 }
 0x20e   : > { %v794_v0 = vpop.f32.mrf.mxu2 }
 0x20f   : > { %v795_v22 = vadd.f32 %v794_v0, %v2870_v30 }
 0x211   : > { %v834_v46 = vmax.f32 %v795_v22, 0.0 }
 0x213   : > { %v851_v16 = vmul.f32 %v2874_v58, %v834_v46 }
 0x215   : > { %v2881_v28 = vadd.f32 %v2877_v50, %v851_v16 }
 0x216   : > { %v796_v9 = vpop.f32.mrf.mxu2 }
 0x217   : > { %v797_v42 = vadd.f32 %v796_v9, %v2870_v30 }
 0x219   : > { %v835_v48 = vmax.f32 %v797_v42, 0.0 }
 0x21a   : > { %v824_v11 = vpop.f32.mrf.mxu3 }
 0x21b   : > { %v852_v13 = vmul.f32 %v2874_v58, %v835_v48  ;;  %v825_v40 = vadd.f32 %v824_v11, %v2870_v30 }
 0x21d   : > { %v2886_v15 = vadd.f32 %v2877_v50, %v852_v13  ;;  %v846_v18 = vmax.f32 %v825_v40, 0.0 }
 0x21e   : > { %v799_v44 = vpop.f32.mrf.mxu2 }
 0x21f   : > { %v800_v17 = vadd.f32 %v799_v44, %v2870_v30  ;;  %v863_v21 = vmul.f32 %v2874_v58, %v846_v18 }
 0x221   : > { %v836_v19 = vmax.f32 %v800_v17, 0.0  ;;  %v2893_v25 = vadd.f32 %v2877_v50, %v863_v21 }
 0x222   : > { %v826_v23 = vpop.f32.mrf.mxu3 }
 0x223   : > { %v853_v33 = vmul.f32 %v2874_v58, %v836_v19  ;;  %v827_v27 = vadd.f32 %v826_v23, %v2870_v30 }
 0x225   : > { %v2897_v35 = vadd.f32 %v2877_v50, %v853_v33  ;;  %v847_v37 = vmax.f32 %v827_v27, 0.0 }
 0x226   : > { %v801_v29 = vpop.f32.mrf.mxu2 }
 0x227   : > { %v802_v31 = vadd.f32 %v801_v29, %v2870_v30  ;;  %v864_v38 = vmul.f32 %v2874_v58, %v847_v37 }
 0x229   : > { %v837_v39 = vmax.f32 %v802_v31, 0.0  ;;  %v2902_v49 = vadd.f32 %v2877_v50, %v864_v38 }
 0x22a   : > { %v829_v51 = vpop.f32.mrf.mxu3 }
 0x22b   : > { %v854_v53 = vmul.f32 %v2874_v58, %v837_v39  ;;  %v830_v45 = vadd.f32 %v829_v51, %v2870_v30 }
 0x22d   : > { %v2906_v55 = vadd.f32 %v2877_v50, %v854_v53  ;;  %v848_v59 = vmax.f32 %v830_v45, 0.0 }
 0x22e   : > { %v804_v47 = vpop.f32.mrf.mxu2 }
 0x22f   : > { %v805_v57 = vadd.f32 %v804_v47, %v2870_v30  ;;  %v865_v56 = vmul.f32 %v2874_v58, %v848_v59 }
 0x231   : > { %v838_v61 = vmax.f32 %v805_v57, 0.0  ;;  %v2913_v43 = vadd.f32 %v2877_v50, %v865_v56 }
 0x232   : > { %v831_v4 = vpop.f32.mrf.mxu3 }
 0x233   : > { %v855_v41 = vmul.f32 %v2874_v58, %v838_v61  ;;  %v832_v24 = vadd.f32 %v831_v4, %v2870_v30 }
 0x235   : > { %v2917_v6 = vadd.f32 %v2877_v50, %v855_v41  ;;  %v849_v63 = vmax.f32 %v832_v24, 0.0 }
 0x236   : > { %v806_v1 = vpop.f32.mrf.mxu2 }
 0x237   : > { %v807_v60 = vadd.f32 %v806_v1, %v2870_v30  ;;  %v866_v62 = vmul.f32 %v2874_v58, %v849_v63 }
 0x239   : > { %v839_v2 = vmax.f32 %v807_v60, 0.0  ;;  %v2922_v3 = vadd.f32 %v2877_v50, %v866_v62 }
 0x23b   : > { %v856_v52 = vmul.f32 %v2874_v58, %v839_v2 }
 0x23d   : > { %v873_v54 = vadd.f32 %v2877_v50, %v856_v52 }
 0x23e   : > { %v809_v5 = vpop.f32.mrf.mxu2 }
 0x23f   : > { %v810_v7 = vadd.f32 %v809_v5, %v2870_v30 }
 0x241   : > { %v840_v26 = vmax.f32 %v810_v7, 0.0 }
 0x243   : > { %v857_v0 = vmul.f32 %v2874_v58, %v840_v26 }
 0x245   : > { %v874_v22 = vadd.f32 %v2877_v50, %v857_v0 }
 0x246   : > { %v811_v46 = vpop.f32.mrf.mxu2 }
 0x247   : > { %v812_v16 = vadd.f32 %v811_v46, %v2870_v30 }
 0x249   : > { %v841_v9 = vmax.f32 %v812_v16, 0.0 }
 0x24b   : > { %v858_v42 = vmul.f32 %v2874_v58, %v841_v9 }
 0x24d   : > { %v875_v48 = vadd.f32 %v2877_v50, %v858_v42 }
 0x24e   : > { %v814_v11 = vpop.f32.mrf.mxu2 }
 0x24f   : > { %v815_v13 = vadd.f32 %v814_v11, %v2870_v30 }
 0x251   : > { %v842_v40 = vmax.f32 %v815_v13, 0.0 }
 0x253   : > { %v859_v44 = vmul.f32 %v2874_v58, %v842_v40 }
 0x255   : > { %v876_v17 = vadd.f32 %v2877_v50, %v859_v44 }
 0x256   : > { %v816_v18 = vpop.f32.mrf.mxu2 }
 0x257   : > { %v817_v19 = vadd.f32 %v816_v18, %v2870_v30 }
 0x259   : > { %v843_v21 = vmax.f32 %v817_v19, 0.0 }
 0x25b   : > { %v860_v23 = vmul.f32 %v2874_v58, %v843_v21 }
 0x25d   : > { %v877_v33 = vadd.f32 %v2877_v50, %v860_v23 }
 0x25e   : > { %v819_v27 = vpop.f32.mrf.mxu2 }
 0x25f   : > { %v820_v37 = vadd.f32 %v819_v27, %v2870_v30 }
 0x261   : > { %v844_v29 = vmax.f32 %v820_v37, 0.0 }
 0x263   : > { %v861_v31 = vmul.f32 %v2874_v58, %v844_v29 }
 0x265   : > { %v878_v38 = vadd.f32 %v2877_v50, %v861_v31 }
 0x266   : > { %v821_v39 = vpop.f32.mrf.mxu2 }
 0x267   : > { %v822_v51 = vadd.f32 %v821_v39, %v2870_v30 }
 0x269   : > { %v845_v53 = vmax.f32 %v822_v51, 0.0  ;;  %887 = sbr.rel (%p1744_p4) target bundleno = 632 (0x278), region = 56 }
 0x26b   : > { %v862_v45 = vmul.f32 %v2874_v58, %v845_v53 }
 0x26d   : > { %v879_v47 = vadd.f32 %v2877_v50, %v862_v45 }
 0x26e   : > { %v1997_v57 = vpack.c.bf16 %v2886_v15, %v2881_v28  ;;  %v2002_v59 = vpack.c.bf16 %v2906_v55, %v2897_v35  ;;  %v2007_v61 = vpack.c.bf16 %v873_v54, %v2917_v6  ;;  %v2012_v56 = vpack.c.bf16 %v875_v48, %v874_v22 }
 0x26f   : > { %v2017_v4 = vpack.c.bf16 %v877_v33, %v876_v17  ;;  %v2022_v30 = vpack.c.bf16 %v879_v47, %v878_v38  ;;  %v2027_v58 = vpack.c.bf16 %v2902_v49, %v2893_v25  ;;  %v2032_v50 = vpack.c.bf16 %v2922_v3, %v2913_v43 }
 0x270   : > { %1998 = vst [vmem:[#allocation2] sm:$0xff] %v1997_v57  }
 0x271   : > { %2114 = vst [vmem:[#allocation2 + $0x8] sm:$0xff] %v2002_v59  }
 0x272   : > { %2115 = vst [vmem:[#allocation2 + $0x10] sm:$0xff] %v2007_v61  }
 0x273   : > { %2116 = vst [vmem:[#allocation2 + $0x18] sm:$0xff] %v2012_v56  }
 0x274   : > { %2117 = vst [vmem:[#allocation2 + $0x20] sm:$0xff] %v2017_v4  }
 0x275   : > { %2118 = vst [vmem:[#allocation2 + $0x28] sm:$0xff] %v2022_v30  }
 0x276   : > { %2119 = vst [vmem:[#allocation2 + $0x30] sm:$0xff] %v2027_v58  }
 0x277   : > { %2120 = vst [vmem:[#allocation2 + $0x38] sm:$0xff] %v2032_v50  }
 0x278 PF: > { %p1745_p5 = scmp.ne.s32.totalorder %s2313_s21, 2 }
 0x27a   : > { %925 = sbr.rel (%p1745_p5) target bundleno = 655 (0x28f), region = 60 }
 0x27f   : > { %927 = vst [vmem:[%s3228_s5] sm:$0xff] %v2881_v28 }
 0x280   : > { %928 = vst [vmem:[%s3228_s5 + $0x8] sm:$0xff] %v2886_v15 }
 0x281   : > { %929 = vst [vmem:[%s3228_s5 + $0x10] sm:$0xff] %v2897_v35 }
 0x282   : > { %930 = vst [vmem:[%s3228_s5 + $0x18] sm:$0xff] %v2906_v55 }
 0x283   : > { %931 = vst [vmem:[%s3228_s5 + $0x20] sm:$0xff] %v2917_v6 }
 0x284   : > { %932 = vst [vmem:[%s3228_s5 + $0x28] sm:$0xff] %v873_v54 }
 0x285   : > { %933 = vst [vmem:[%s3228_s5 + $0x30] sm:$0xff] %v874_v22 }
 0x286   : > { %934 = vst [vmem:[%s3228_s5 + $0x38] sm:$0xff] %v875_v48 }
 0x287   : > { %935 = vst [vmem:[%s3228_s5 + $0x40] sm:$0xff] %v876_v17 }
 0x288   : > { %936 = vst [vmem:[%s3228_s5 + $0x48] sm:$0xff] %v877_v33 }
 0x289   : > { %937 = vst [vmem:[%s3228_s5 + $0x50] sm:$0xff] %v878_v38 }
 0x28a   : > { %938 = vst [vmem:[%s3228_s5 + $0x58] sm:$0xff] %v879_v47 }
 0x28b   : > { %939 = vst [vmem:[%s3228_s5 + $0x60] sm:$0xff] %v2893_v25 }
 0x28c   : > { %940 = vst [vmem:[%s3228_s5 + $0x68] sm:$0xff] %v2902_v49 }
 0x28d   : > { %941 = vst [vmem:[%s3228_s5 + $0x70] sm:$0xff] %v2913_v43 }
 0x28e   : > { %942 = vst [vmem:[%s3228_s5 + $0x78] sm:$0xff] %v2922_v3 }
 0x28f PF: > { %p1746_p6 = scmp.ne.s32.totalorder %s3323_s27, 1 }
 0x290   : > { %p1875_p7 = scmp.ge.s32.totalorder (!%p1746_p6), %s2313_s21, 2 }
 0x291   : > { %946 = sbr.rel (%p1746_p6) target bundleno = 1232 (0x4d0), region = 64 }
 0x296   : > { %v1961_v28 = vld [vmem:[#allocation2 + $0x38] sm:$0xff]  ;;  %v1960_v15 = vld [vmem:[#allocation2 + $0x30] sm:$0xff]  ;;  %v1959_v25 = vld [vmem:[#allocation2 + $0x28] sm:$0xff]  ;;  %v1750_v24 = vor.u32 %v2472_v10, %v2462_v8  ;;  %v1774_v6 = vor.u32 %v2592_v34, %v2582_v32  ;;  %v1754_v63 = vor.u32 %v2492_v14, %v2482_v12 }
 0x297   : > { %1095 = vmatpush.bf16.msra.mxu0 %v1961_v28  ;;  %2160 = vmatpush.bf16.msra.mxu3 %v1961_v28  ;;  %v1958_v35 = vld [vmem:[#allocation2 + $0x20] sm:$0xff]  ;;  %v1957_v49 = vld [vmem:[#allocation2 + $0x18] sm:$0xff]  ;;  %v1956_v55 = vld [vmem:[#allocation2 + $0x10] sm:$0xff] }
 0x298   : > { %v1955_v41 = vld [vmem:[#allocation2 + $0x8] sm:$0xff]  ;;  %v1954_v43 = vld [vmem:[#allocation2] sm:$0xff]  ;;  %v3275_v8 = vld [vmem:[#allocation8_spill] sm:$0xff] }
 0x299   : > { %v3272_v1 = vld [vmem:[#allocation14_spill] sm:$0xff]  ;;  %v3274_v2 = vld [vmem:[#allocation7_spill] sm:$0xff]  ;;  %v3276_v10 = vld [vmem:[#allocation9_spill] sm:$0xff] }
 0x29a   : > { %v1778_v60 = vor.u32 %v3272_v1, %v2602_v36  ;;  %v3273_v62 = vld [vmem:[#allocation6_spill] sm:$0xff]  ;;  %v1762_v52 = vor.u32 %v3276_v10, %v3275_v8  ;;  %v3277_v32 = vld [vmem:[#allocation29_spill] sm:$0xff]  ;;  %v3279_v5 = vld [vmem:[#allocation27_spill] sm:$0xff] }
 0x29b   : > { %1096 = vmatpush.bf16.msra.mxu0 %v1960_v15  ;;  %2161 = vmatpush.bf16.msra.mxu3 %v1960_v15  ;;  %v1758_v3 = vor.u32 %v3274_v2, %v3273_v62  ;;  %v3278_v34 = vld [vmem:[#allocation30_spill] sm:$0xff]  ;;  %v3280_v7 = vld [vmem:[#allocation28_spill] sm:$0xff]  ;;  %v3281_v14 = vld [vmem:[#allocation25_spill] sm:$0xff] }
 0x29c   : > { %v1842_v54 = vor.u32 %v3278_v34, %v3277_v32  ;;  %v1838_v12 = vor.u32 %v3280_v7, %v3279_v5  ;;  %v3282_v36 = vld [vmem:[#allocation26_spill] sm:$0xff]  ;;  %v3283_v0 = vld [vmem:[#allocation23_spill] sm:$0xff]  ;;  %v3284_v22 = vld [vmem:[#allocation24_spill] sm:$0xff] }
 0x29d   : > { %v1834_v26 = vor.u32 %v3282_v36, %v3281_v14  ;;  %v1830_v46 = vor.u32 %v3284_v22, %v3283_v0  ;;  %v3285_v16 = vld [vmem:[#allocation10_spill] sm:$0xff]  ;;  %v3286_v9 = vld [vmem:[#allocation11_spill] sm:$0xff]  ;;  %v3287_v48 = vld [vmem:[#allocation21_spill] sm:$0xff] }
 0x29e   : > { %1201 = vmatpush.bf16.msra.mxu1 %v1842_v54  ;;  %v1766_v42 = vor.u32 %v3286_v9, %v3285_v16  ;;  %v3288_v11 = vld [vmem:[#allocation22_spill] sm:$0xff]  ;;  %v3289_v40 = vld [vmem:[#allocation12_spill] sm:$0xff]  ;;  %v3290_v44 = vld [vmem:[#allocation13_spill] sm:$0xff] }
 0x29f   : > { %1097 = vmatpush.bf16.msra.mxu0 %v1959_v25  ;;  %2162 = vmatpush.bf16.msra.mxu3 %v1959_v25  ;;  %v1826_v13 = vor.u32 %v3288_v11, %v3287_v48  ;;  %v1770_v17 = vor.u32 %v3290_v44, %v3289_v40  ;;  %v3291_v18 = vld [vmem:[#allocation19_spill] sm:$0xff]  ;;  %v3292_v19 = vld [vmem:[#allocation20_spill] sm:$0xff]  ;;  %v3293_v23 = vld [vmem:[#allocation17_spill] sm:$0xff] }
 0x2a0   : > { %v1822_v21 = vor.u32 %v3292_v19, %v3291_v18  ;;  %v3294_v33 = vld [vmem:[#allocation18_spill] sm:$0xff]  ;;  %v3295_v37 = vld [vmem:[#allocation15_spill] sm:$0xff]  ;;  %v3296_v29 = vld [vmem:[#allocation16_spill] sm:$0xff] }
 0x2a1   : > { %v1818_v27 = vor.u32 %v3294_v33, %v3293_v23  ;;  %v1814_v31 = vor.u32 %v3296_v29, %v3295_v37  ;;  %v2035_v39 = vld [vmem:[#allocation2] sm:$0xff]   ;;  %v2126_v45 = vld [vmem:[#allocation2 + $0x30] sm:$0xff]   ;;  %v3297_v48 = vld [vmem:[#allocation45_spill] sm:$0xff] }
 0x2a2   : > { %1202 = vmatpush.bf16.msra.mxu1 %v1838_v12  ;;  %v2036_v51 = vunpack.c.l.bf16 %v2035_v39  ;;  %v2037_v53 = vunpack.c.h.bf16 %v2035_v39  ;;  %v2060_v56 = vunpack.c.l.bf16 %v2126_v45  ;;  %v2061_v30 = vunpack.c.h.bf16 %v2126_v45  ;;  %v2122_v32 = vld [vmem:[#allocation2 + $0x10] sm:$0xff]   ;;  %v3298_v11 = vld [vmem:[#allocation46_spill] sm:$0xff]  ;;  %v3299_v40 = vld [vmem:[#allocation43_spill] sm:$0xff] }
 0x2a3   : > { %1098 = vmatpush.bf16.msra.mxu0 %v1958_v35  ;;  %2163 = vmatpush.bf16.msra.mxu3 %v1958_v35  ;;  %v2121_v35 = vld [vmem:[#allocation2 + $0x8] sm:$0xff]   ;;  %v2044_v34 = vunpack.c.l.bf16 %v2122_v32  ;;  %v3300_v44 = vld [vmem:[#allocation44_spill] sm:$0xff]  ;;  %v2124_v19 = vld [vmem:[#allocation2 + $0x20] sm:$0xff]  }
 0x2a4   : > { %v3302_v23 = vld [vmem:[#allocation42_spill] sm:$0xff]  ;;  %v2053_v37 = vunpack.c.h.bf16 %v2124_v19  ;;  %v3303_v29 = vld [vmem:[#allocation39_spill] sm:$0xff] }
 0x2a6   : > { %1203 = vmatpush.bf16.msra.mxu1 %v1834_v26 }
 0x2a7   : > { %1099 = vmatpush.bf16.msra.mxu0 %v1957_v49  ;;  %2164 = vmatpush.bf16.msra.mxu3 %v1957_v49  ;;  %v2040_v49 = vunpack.c.l.bf16 %v2121_v35 }
 0x2aa   : > { %1204 = vmatpush.bf16.msra.mxu1 %v1830_v46 }
 0x2ab   : > { %1100 = vmatpush.bf16.msra.mxu0 %v1956_v55  ;;  %2165 = vmatpush.bf16.msra.mxu3 %v1956_v55  ;;  %v2041_v55 = vunpack.c.h.bf16 %v2121_v35  ;;  %v3308_v35 = vld [vmem:[#allocation36_spill] sm:$0xff] }
 0x2ae   : > { %1205 = vmatpush.bf16.msra.mxu1 %v1826_v13 }
 0x2af   : > { %1101 = vmatpush.bf16.msra.mxu0 %v1955_v41  ;;  %2166 = vmatpush.bf16.msra.mxu3 %v1955_v41  ;;  %v2127_v41 = vld [vmem:[#allocation2 + $0x38] sm:$0xff]  }
 0x2b0   : > { %v2064_v1 = vunpack.c.l.bf16 %v2127_v41  ;;  %v2065_v62 = vunpack.c.h.bf16 %v2127_v41  ;;  %v3310_v41 = vld [vmem:[#allocation34_spill] sm:$0xff] }
 0x2b2   : > { %1206 = vmatpush.bf16.msra.mxu1 %v1822_v21 }
 0x2b3   : > { %1102 = vmatpush.bf16.msra.mxu0 %v1954_v43  ;;  %2167 = vmatpush.bf16.msra.mxu3 %v1954_v43 }
 0x2b6   : > { %1103 = vmatmul.bf16.vlgmr.msra.gmra.mxu0 %v1750_v24  ;;  %1133 = vmatmul.bf16.vlgmr.msra.gmra.mxu3 %v1774_v6 }
 0x2b7   : > { %2168 = vmatpush.bf16.msrb.mxu3 %v1842_v54  ;;  %1207 = vmatpush.bf16.msra.mxu1 %v1818_v27  ;;  %v2045_v54 = vunpack.c.h.bf16 %v2122_v32 }
 0x2bb   : > { %2169 = vmatpush.bf16.msrb.mxu3 %v1838_v12  ;;  %1208 = vmatpush.bf16.msra.mxu1 %v1814_v31 }
 0x2bf   : > { %2170 = vmatpush.bf16.msrb.mxu3 %v1834_v26  ;;  %v2123_v26 = vld [vmem:[#allocation2 + $0x18] sm:$0xff]  }
 0x2c0   : > { %v2048_v0 = vunpack.c.l.bf16 %v2123_v26  ;;  %v2049_v22 = vunpack.c.h.bf16 %v2123_v26 }
 0x2c3   : > { %2171 = vmatpush.bf16.msrb.mxu3 %v1830_v46 }
 0x2c6   : > { %1108 = vmatmul.bf16.gmra.mxu0 %v1754_v63  ;;  %1138 = vmatmul.bf16.gmra.mxu3 %v1778_v60 }
 0x2c7   : > { %2172 = vmatpush.bf16.msrb.mxu3 %v1826_v13  ;;  %v1874_v13 = vor.u32 %v3298_v11, %v3297_v48 }
 0x2c9   : > { %1323 = vmatpush.bf16.msra.mxu2 %v1874_v13 }
 0x2cb   : > { %2173 = vmatpush.bf16.msrb.mxu3 %v1822_v21  ;;  %v3301_v21 = vld [vmem:[#allocation41_spill] sm:$0xff] }
 0x2cc   : > { %v1866_v33 = vor.u32 %v3302_v23, %v3301_v21 }
 0x2cf   : > { %2174 = vmatpush.bf16.msrb.mxu3 %v1818_v27  ;;  %v2052_v27 = vunpack.c.l.bf16 %v2124_v19 }
 0x2d3   : > { %2175 = vmatpush.bf16.msrb.mxu3 %v1814_v31  ;;  %v3304_v31 = vld [vmem:[#allocation40_spill] sm:$0xff] }
 0x2d6   : > { %1113 = vmatmul.bf16.gmra.mxu0 %v1758_v3 }
 0x2d7   : > { %2176 = vmatpush.bf16.msra.mxu3 %v1874_v13 }
 0x2e6   : > { %1118 = vmatmul.bf16.gmra.mxu0 %v1762_v52 }
 0x2f6   : > { %1123 = vmatmul.bf16.gmra.mxu0 %v1766_v42 }
 0x306   : > { %1128 = vmatmul.bf16.gmra.mxu0 %v1770_v17  ;;  %v1870_v17 = vor.u32 %v3300_v44, %v3299_v40 }
 0x308   : > { %1324 = vmatpush.bf16.msra.mxu2 %v1870_v17  ;;  %2177 = vmatpush.bf16.msra.mxu3 %v1870_v17 }
 0x30c   : > { %1325 = vmatpush.bf16.msra.mxu2 %v1866_v33  ;;  %2178 = vmatpush.bf16.msra.mxu3 %v1866_v33 }
 0x333   : > { %v1104_v38 = vpop.f32.mrf.mxu0 }
 0x334   : > { %v1105_v59 = vadd.f32 %v2036_v51, %v1104_v38  ;;  %v1862_v38 = vor.u32 %v3304_v31, %v3303_v29 }
 0x336   : > { %1326 = vmatpush.bf16.msra.mxu2 %v1862_v38  ;;  %2179 = vmatpush.bf16.msra.mxu3 %v1862_v38 }
 0x339   : > { %v1134_v47 = vpop.f32.mrf.mxu3 }
 0x33a   : > { %v1135_v58 = vadd.f32 %v2060_v56, %v1134_v47 }
 0x33b   : > { %v1106_v57 = vpop.f32.mrf.mxu0 }
 0x33c   : > { %v1107_v61 = vadd.f32 %v2037_v53, %v1106_v57  ;;  %v2125_v57 = vld [vmem:[#allocation2 + $0x28] sm:$0xff]  }
 0x33e   : > { %v1144_v4 = vpack.c.bf16 %v1107_v61, %v1105_v59  ;;  %v2056_v59 = vunpack.c.l.bf16 %v2125_v57  ;;  %v2057_v61 = vunpack.c.h.bf16 %v2125_v57 }
 0x340   : > { %1209 = vmatmul.bf16.vlgmr.msra.gmra.mxu1 %v1144_v4 }
 0x341   : > { %v1136_v50 = vpop.f32.mrf.mxu3 }
 0x342   : > { %v1137_v28 = vadd.f32 %v2061_v30, %v1136_v50  ;;  %v3305_v50 = vld [vmem:[#allocation37_spill] sm:$0xff] }
 0x343   : > { %v1109_v15 = vpop.f32.mrf.mxu0 }
 0x344   : > { %v1150_v25 = vpack.c.bf16 %v1137_v28, %v1135_v58  ;;  %v1110_v6 = vadd.f32 %v2040_v49, %v1109_v15  ;;  %v3306_v28 = vld [vmem:[#allocation38_spill] sm:$0xff] }
 0x345   : > { %v1858_v15 = vor.u32 %v3306_v28, %v3305_v50 }
 0x346   : > { %1239 = vmatmul.bf16.vlgmr.msrb.gmra.mxu3 %v1150_v25  ;;  %v3307_v25 = vld [vmem:[#allocation35_spill] sm:$0xff] }
 0x347   : > { %1327 = vmatpush.bf16.msra.mxu2 %v1858_v15  ;;  %2180 = vmatpush.bf16.msra.mxu3 %v1858_v15  ;;  %v1854_v49 = vor.u32 %v3308_v35, %v3307_v25 }
 0x349   : > { %v1139_v43 = vpop.f32.mrf.mxu3 }
 0x34a   : > { %v1140_v2 = vadd.f32 %v2064_v1, %v1139_v43 }
 0x34b   : > { %v1111_v24 = vpop.f32.mrf.mxu0  ;;  %1328 = vmatpush.bf16.msra.mxu2 %v1854_v49  ;;  %2181 = vmatpush.bf16.msra.mxu3 %v1854_v49 }
 0x34c   : > { %v1112_v63 = vadd.f32 %v2041_v55, %v1111_v24  ;;  %v3309_v55 = vld [vmem:[#allocation33_spill] sm:$0xff]  ;;  %v3311_v24 = vld [vmem:[#allocation31_spill] sm:$0xff] }
 0x34d   : > { %v1850_v43 = vor.u32 %v3310_v41, %v3309_v55  ;;  %v3063_v55 = vperm.slane %v2812_v20, 1 }
 0x34e   : > { %v1145_v60 = vpack.c.bf16 %v1112_v63, %v1110_v6  ;;  %v3312_v6 = vld [vmem:[#allocation32_spill] sm:$0xff] }
 0x34f   : > { %1329 = vmatpush.bf16.msra.mxu2 %v1850_v43  ;;  %2182 = vmatpush.bf16.msra.mxu3 %v1850_v43  ;;  %v1846_v63 = vor.u32 %v3312_v6, %v3311_v24  ;;  %v3067_v24 = vperm.slane %v2812_v20, 2 }
 0x350   : > { %1214 = vmatmul.bf16.gmra.mxu1 %v1145_v60  ;;  %v1152_v60 = vperm.slane %v2812_v20, 0 }
 0x351   : > { %v1141_v3 = vpop.f32.mrf.mxu3 }
 0x352   : > { %v1142_v8 = vadd.f32 %v2065_v62, %v1141_v3 }
 0x353   : > { %v1114_v10 = vpop.f32.mrf.mxu0  ;;  %1330 = vmatpush.bf16.msra.mxu2 %v1846_v63  ;;  %2183 = vmatpush.bf16.msra.mxu3 %v1846_v63  ;;  %v3070_v63 = vperm.slane %v2812_v20, 3 }
 0x354   : > { %v1151_v52 = vpack.c.bf16 %v1142_v8, %v1140_v2  ;;  %v1115_v7 = vadd.f32 %v2044_v34, %v1114_v10 }
 0x356   : > { %1244 = vmatmul.bf16.gmra.mxu3 %v1151_v52 }
 0x35b   : > { %v1116_v5 = vpop.f32.mrf.mxu0 }
 0x35c   : > { %v1117_v12 = vadd.f32 %v2045_v54, %v1116_v5 }
 0x35e   : > { %v1146_v14 = vpack.c.bf16 %v1117_v12, %v1115_v7 }
 0x360   : > { %1219 = vmatmul.bf16.gmra.mxu1 %v1146_v14 }
 0x363   : > { %v1119_v36 = vpop.f32.mrf.mxu0 }
 0x364   : > { %v1120_v16 = vadd.f32 %v2048_v0, %v1119_v36 }
 0x36b   : > { %v1121_v46 = vpop.f32.mrf.mxu0 }
 0x36c   : > { %v1122_v9 = vadd.f32 %v2049_v22, %v1121_v46 }
 0x36e   : > { %v1147_v42 = vpack.c.bf16 %v1122_v9, %v1120_v16 }
 0x370   : > { %1224 = vmatmul.bf16.gmra.mxu1 %v1147_v42 }
 0x373   : > { %v1124_v18 = vpop.f32.mrf.mxu0 }
 0x374   : > { %v1125_v51 = vadd.f32 %v2052_v27, %v1124_v18 }
 0x37b   : > { %v1126_v39 = vpop.f32.mrf.mxu0 }
 0x37c   : > { %v1127_v53 = vadd.f32 %v2053_v37, %v1126_v39 }
 0x37e   : > { %v1148_v45 = vpack.c.bf16 %v1127_v53, %v1125_v51 }
 0x380   : > { %1229 = vmatmul.bf16.gmra.mxu1 %v1148_v45 }
 0x383   : > { %v1129_v47 = vpop.f32.mrf.mxu0 }
 0x384   : > { %v1130_v4 = vadd.f32 %v2056_v59, %v1129_v47 }
 0x38b   : > { %v1131_v56 = vpop.f32.mrf.mxu0 }
 0x38c   : > { %v1132_v30 = vadd.f32 %v2057_v61, %v1131_v56 }
 0x38e   : > { %v1149_v58 = vpack.c.bf16 %v1132_v30, %v1130_v4 }
 0x390   : > { %1234 = vmatmul.bf16.gmra.mxu1 %v1149_v58 }
 0x3bd   : > { %v1210_v1 = vpop.f32.mrf.mxu1 }
 0x3be   : > { %v1211_v62 = vadd.f32 %v1210_v1, %v1152_v60 }
 0x3c0   : > { %v1250_v8 = vmax.f32 %v1211_v62, 0.0 }
 0x3c5   : > { %v1212_v2 = vpop.f32.mrf.mxu1 }
 0x3c6   : > { %v1213_v3 = vadd.f32 %v1212_v2, %v1152_v60 }
 0x3c8   : > { %v1251_v10 = vmax.f32 %v1213_v3, 0.0 }
 0x3c9   : > { %v1240_v52 = vpop.f32.mrf.mxu3 }
 0x3ca   : > { %v1266_v32 = vpack.c.bf16 %v1251_v10, %v1250_v8  ;;  %v1241_v54 = vadd.f32 %v1240_v52, %v1152_v60 }
 0x3cc   : > { %1331 = vmatmul.bf16.vlgmr.msra.gmra.mxu2 %v1266_v32  ;;  %v1262_v7 = vmax.f32 %v1241_v54, 0.0 }
 0x3cd   : > { %v1215_v34 = vpop.f32.mrf.mxu1 }
 0x3ce   : > { %v1216_v14 = vadd.f32 %v1215_v34, %v1152_v60 }
 0x3d0   : > { %v1252_v46 = vmax.f32 %v1216_v14, 0.0 }
 0x3d1   : > { %v1242_v5 = vpop.f32.mrf.mxu3 }
 0x3d2   : > { %v1243_v12 = vadd.f32 %v1242_v5, %v1152_v60 }
 0x3d4   : > { %v1263_v36 = vmax.f32 %v1243_v12, 0.0 }
 0x3d5   : > { %v1217_v26 = vpop.f32.mrf.mxu1 }
 0x3d6   : > { %v1218_v0 = vadd.f32 %v1217_v26, %v1152_v60  ;;  %v1272_v22 = vpack.c.bf16 %v1263_v36, %v1262_v7 }
 0x3d8   : > { %v1253_v16 = vmax.f32 %v1218_v0, 0.0  ;;  %1361 = vmatmul.bf16.vlgmr.msra.gmra.mxu3 %v1272_v22 }
 0x3d9   : > { %v1245_v9 = vpop.f32.mrf.mxu3 }
 0x3da   : > { %v1267_v42 = vpack.c.bf16 %v1253_v16, %v1252_v46  ;;  %v1246_v11 = vadd.f32 %v1245_v9, %v1152_v60 }
 0x3dc   : > { %1336 = vmatmul.bf16.gmra.mxu2 %v1267_v42  ;;  %v1264_v40 = vmax.f32 %v1246_v11, 0.0 }
 0x3dd   : > { %v1220_v48 = vpop.f32.mrf.mxu1 }
 0x3de   : > { %v1221_v17 = vadd.f32 %v1220_v48, %v1152_v60 }
 0x3e0   : > { %v1254_v33 = vmax.f32 %v1221_v17, 0.0 }
 0x3e1   : > { %v1247_v13 = vpop.f32.mrf.mxu3 }
 0x3e2   : > { %v1248_v44 = vadd.f32 %v1247_v13, %v1152_v60 }
 0x3e4   : > { %v1265_v18 = vmax.f32 %v1248_v44, 0.0 }
 0x3e5   : > { %v1222_v19 = vpop.f32.mrf.mxu1 }
 0x3e6   : > { %v1223_v21 = vadd.f32 %v1222_v19, %v1152_v60  ;;  %v1273_v23 = vpack.c.bf16 %v1265_v18, %v1264_v40 }
 0x3e8   : > { %v1255_v27 = vmax.f32 %v1223_v21, 0.0  ;;  %1366 = vmatmul.bf16.gmra.mxu3 %v1273_v23 }
 0x3ea   : > { %v1268_v37 = vpack.c.bf16 %v1255_v27, %v1254_v33 }
 0x3ec   : > { %1341 = vmatmul.bf16.gmra.mxu2 %v1268_v37 }
 0x3ed   : > { %v1225_v29 = vpop.f32.mrf.mxu1 }
 0x3ee   : > { %v1226_v31 = vadd.f32 %v1225_v29, %v1152_v60 }
 0x3f0   : > { %v1256_v51 = vmax.f32 %v1226_v31, 0.0 }
 0x3f5   : > { %v1227_v38 = vpop.f32.mrf.mxu1 }
 0x3f6   : > { %v1228_v39 = vadd.f32 %v1227_v38, %v1152_v60 }
 0x3f8   : > { %v1257_v53 = vmax.f32 %v1228_v39, 0.0 }
 0x3fa   : > { %v1269_v45 = vpack.c.bf16 %v1257_v53, %v1256_v51 }
 0x3fc   : > { %1346 = vmatmul.bf16.gmra.mxu2 %v1269_v45 }
 0x3fd   : > { %v1230_v47 = vpop.f32.mrf.mxu1 }
 0x3fe   : > { %v1231_v57 = vadd.f32 %v1230_v47, %v1152_v60 }
 0x400   : > { %v1258_v56 = vmax.f32 %v1231_v57, 0.0 }
 0x405   : > { %v1232_v59 = vpop.f32.mrf.mxu1 }
 0x406   : > { %v1233_v61 = vadd.f32 %v1232_v59, %v1152_v60 }
 0x408   : > { %v1259_v4 = vmax.f32 %v1233_v61, 0.0 }
 0x40a   : > { %v1270_v30 = vpack.c.bf16 %v1259_v4, %v1258_v56 }
 0x40c   : > { %1351 = vmatmul.bf16.gmra.mxu2 %v1270_v30 }
 0x40d   : > { %v1235_v58 = vpop.f32.mrf.mxu1 }
 0x40e   : > { %v1236_v50 = vadd.f32 %v1235_v58, %v1152_v60 }
 0x410   : > { %v1260_v25 = vmax.f32 %v1236_v50, 0.0 }
 0x415   : > { %v1237_v28 = vpop.f32.mrf.mxu1 }
 0x416   : > { %v1238_v15 = vadd.f32 %v1237_v28, %v1152_v60 }
 0x418   : > { %v1261_v35 = vmax.f32 %v1238_v15, 0.0 }
 0x41a   : > { %v1271_v49 = vpack.c.bf16 %v1261_v35, %v1260_v25 }
 0x41c   : > { %1356 = vmatmul.bf16.gmra.mxu2 %v1271_v49 }
 0x44f   : > { %v1332_v41 = vpop.f32.mrf.mxu2 }
 0x450   : > { %v1333_v43 = vadd.f32 %v1332_v41, %v3063_v55 }
 0x452   : > { %v1372_v6 = vmax.f32 %v1333_v43, 0.0 }
 0x454   : > { %v1389_v1 = vmul.f32 %v3067_v24, %v1372_v6 }
 0x456   : > { %v3074_v60 = vadd.f32 %v3070_v63, %v1389_v1 }
 0x457   : > { %v1334_v62 = vpop.f32.mrf.mxu2 }
 0x458   : > { %v1335_v2 = vadd.f32 %v1334_v62, %v3063_v55 }
 0x45a   : > { %v1373_v3 = vmax.f32 %v1335_v2, 0.0 }
 0x45b   : > { %v1362_v8 = vpop.f32.mrf.mxu3 }
 0x45c   : > { %v1390_v10 = vmul.f32 %v3067_v24, %v1373_v3  ;;  %v1363_v32 = vadd.f32 %v1362_v8, %v3063_v55 }
 0x45e   : > { %v3079_v52 = vadd.f32 %v3070_v63, %v1390_v10  ;;  %v1384_v54 = vmax.f32 %v1363_v32, 0.0 }
 0x45f   : > { %v1337_v34 = vpop.f32.mrf.mxu2 }
 0x460   : > { %v1338_v20 = vadd.f32 %v1337_v34, %v3063_v55  ;;  %v1401_v7 = vmul.f32 %v3067_v24, %v1384_v54 }
 0x462   : > { %v1374_v5 = vmax.f32 %v1338_v20, 0.0  ;;  %v3086_v36 = vadd.f32 %v3070_v63, %v1401_v7 }
 0x463   : > { %v1364_v12 = vpop.f32.mrf.mxu3 }
 0x464   : > { %v1391_v14 = vmul.f32 %v3067_v24, %v1374_v5  ;;  %v1365_v26 = vadd.f32 %v1364_v12, %v3063_v55 }
 0x466   : > { %v3090_v0 = vadd.f32 %v3070_v63, %v1391_v14  ;;  %v1385_v22 = vmax.f32 %v1365_v26, 0.0 }
 0x467   : > { %v1339_v46 = vpop.f32.mrf.mxu2 }
 0x468   : > { %v1340_v16 = vadd.f32 %v1339_v46, %v3063_v55  ;;  %v1402_v9 = vmul.f32 %v3067_v24, %v1385_v22 }
 0x46a   : > { %v1375_v42 = vmax.f32 %v1340_v16, 0.0  ;;  %v3095_v48 = vadd.f32 %v3070_v63, %v1402_v9 }
 0x46b   : > { %v1367_v11 = vpop.f32.mrf.mxu3 }
 0x46c   : > { %v1392_v13 = vmul.f32 %v3067_v24, %v1375_v42  ;;  %v1368_v44 = vadd.f32 %v1367_v11, %v3063_v55 }
 0x46e   : > { %v3099_v40 = vadd.f32 %v3070_v63, %v1392_v13  ;;  %v1386_v19 = vmax.f32 %v1368_v44, 0.0 }
 0x46f   : > { %v1342_v17 = vpop.f32.mrf.mxu2 }
 0x470   : > { %v1343_v18 = vadd.f32 %v1342_v17, %v3063_v55  ;;  %v1403_v23 = vmul.f32 %v3067_v24, %v1386_v19 }
 0x472   : > { %v1376_v21 = vmax.f32 %v1343_v18, 0.0  ;;  %v3106_v37 = vadd.f32 %v3070_v63, %v1403_v23 }
 0x473   : > { %v1369_v33 = vpop.f32.mrf.mxu3 }
 0x474   : > { %v1393_v27 = vmul.f32 %v3067_v24, %v1376_v21  ;;  %v1370_v29 = vadd.f32 %v1369_v33, %v3063_v55 }
 0x476   : > { %v3110_v31 = vadd.f32 %v3070_v63, %v1393_v27  ;;  %v1387_v38 = vmax.f32 %v1370_v29, 0.0 }
 0x477   : > { %v1344_v39 = vpop.f32.mrf.mxu2 }
 0x478   : > { %v1345_v51 = vadd.f32 %v1344_v39, %v3063_v55  ;;  %v1404_v53 = vmul.f32 %v3067_v24, %v1387_v38 }
 0x47a   : > { %v1377_v45 = vmax.f32 %v1345_v51, 0.0  ;;  %v3115_v47 = vadd.f32 %v3070_v63, %v1404_v53 }
 0x47c   : > { %v1394_v57 = vmul.f32 %v3067_v24, %v1377_v45 }
 0x47e   : > { %v1411_v59 = vadd.f32 %v3070_v63, %v1394_v57 }
 0x47f   : > { %v1347_v61 = vpop.f32.mrf.mxu2 }
 0x480   : > { %v1348_v56 = vadd.f32 %v1347_v61, %v3063_v55 }
 0x482   : > { %v1378_v4 = vmax.f32 %v1348_v56, 0.0 }
 0x484   : > { %v1395_v30 = vmul.f32 %v3067_v24, %v1378_v4 }
 0x486   : > { %v1412_v58 = vadd.f32 %v3070_v63, %v1395_v30 }
 0x487   : > { %v1349_v50 = vpop.f32.mrf.mxu2 }
 0x488   : > { %v1350_v28 = vadd.f32 %v1349_v50, %v3063_v55 }
 0x48a   : > { %v1379_v15 = vmax.f32 %v1350_v28, 0.0 }
 0x48c   : > { %v1396_v25 = vmul.f32 %v3067_v24, %v1379_v15 }
 0x48e   : > { %v1413_v35 = vadd.f32 %v3070_v63, %v1396_v25 }
 0x48f   : > { %v1352_v49 = vpop.f32.mrf.mxu2 }
 0x490   : > { %v1353_v41 = vadd.f32 %v1352_v49, %v3063_v55 }
 0x492   : > { %v1380_v43 = vmax.f32 %v1353_v41, 0.0 }
 0x494   : > { %v1397_v6 = vmul.f32 %v3067_v24, %v1380_v43 }
 0x496   : > { %v1414_v1 = vadd.f32 %v3070_v63, %v1397_v6 }
 0x497   : > { %v1354_v62 = vpop.f32.mrf.mxu2 }
 0x498   : > { %v1355_v2 = vadd.f32 %v1354_v62, %v3063_v55 }
 0x49a   : > { %v1381_v3 = vmax.f32 %v1355_v2, 0.0 }
 0x49c   : > { %v1398_v8 = vmul.f32 %v3067_v24, %v1381_v3 }
 0x49e   : > { %v1415_v10 = vadd.f32 %v3070_v63, %v1398_v8 }
 0x49f   : > { %v1357_v32 = vpop.f32.mrf.mxu2 }
 0x4a0   : > { %v1358_v34 = vadd.f32 %v1357_v32, %v3063_v55 }
 0x4a2   : > { %v1382_v20 = vmax.f32 %v1358_v34, 0.0 }
 0x4a4   : > { %v1399_v54 = vmul.f32 %v3067_v24, %v1382_v20 }
 0x4a6   : > { %v1416_v5 = vadd.f32 %v3070_v63, %v1399_v54 }
 0x4a7   : > { %v1359_v7 = vpop.f32.mrf.mxu2 }
 0x4a8   : > { %v1360_v12 = vadd.f32 %v1359_v7, %v3063_v55 }
 0x4aa   : > { %v1383_v14 = vmax.f32 %v1360_v12, 0.0  ;;  %1425 = sbr.rel (%p1875_p7) target bundleno = 1209 (0x4b9), region = 68 }
 0x4ac   : > { %v1400_v26 = vmul.f32 %v3067_v24, %v1383_v14 }
 0x4ae   : > { %v1417_v22 = vadd.f32 %v3070_v63, %v1400_v26 }
 0x4af   : > { %v2069_v46 = vpack.c.bf16 %v3079_v52, %v3074_v60  ;;  %v2074_v16 = vpack.c.bf16 %v3099_v40, %v3090_v0  ;;  %v2079_v9 = vpack.c.bf16 %v1411_v59, %v3110_v31  ;;  %v2084_v42 = vpack.c.bf16 %v1413_v35, %v1412_v58 }
 0x4b0   : > { %v2089_v11 = vpack.c.bf16 %v1415_v10, %v1414_v1  ;;  %v2094_v55 = vpack.c.bf16 %v1417_v22, %v1416_v5  ;;  %v2099_v24 = vpack.c.bf16 %v3095_v48, %v3086_v36  ;;  %v2104_v63 = vpack.c.bf16 %v3115_v47, %v3106_v37 }
 0x4b1   : > { %2128 = vst [vmem:[#allocation2 + $0x40] sm:$0xff] %v2069_v46  }
 0x4b2   : > { %2129 = vst [vmem:[#allocation2 + $0x48] sm:$0xff] %v2074_v16  }
 0x4b3   : > { %2130 = vst [vmem:[#allocation2 + $0x50] sm:$0xff] %v2079_v9  }
 0x4b4   : > { %2131 = vst [vmem:[#allocation2 + $0x58] sm:$0xff] %v2084_v42  }
 0x4b5   : > { %2132 = vst [vmem:[#allocation2 + $0x60] sm:$0xff] %v2089_v11  }
 0x4b6   : > { %2133 = vst [vmem:[#allocation2 + $0x68] sm:$0xff] %v2094_v55  }
 0x4b7   : > { %2134 = vst [vmem:[#allocation2 + $0x70] sm:$0xff] %v2099_v24  }
 0x4b8   : > { %2135 = vst [vmem:[#allocation2 + $0x78] sm:$0xff] %v2104_v63  }
 0x4b9 PF: > { %p1892_p8 = scmp.ne.s32.totalorder %s2313_s21, 2 }
 0x4bb   : > { %1464 = sbr.rel (%p1892_p8) target bundleno = 1232 (0x4d0), region = 72 }
 0x4c0   : > { %1466 = vst [vmem:[%s3228_s5] sm:$0xff] %v3074_v60 }
 0x4c1   : > { %1467 = vst [vmem:[%s3228_s5 + $0x8] sm:$0xff] %v3079_v52 }
 0x4c2   : > { %1468 = vst [vmem:[%s3228_s5 + $0x10] sm:$0xff] %v3090_v0 }
 0x4c3   : > { %1469 = vst [vmem:[%s3228_s5 + $0x18] sm:$0xff] %v3099_v40 }
 0x4c4   : > { %1470 = vst [vmem:[%s3228_s5 + $0x20] sm:$0xff] %v3110_v31 }
 0x4c5   : > { %1471 = vst [vmem:[%s3228_s5 + $0x28] sm:$0xff] %v1411_v59 }
 0x4c6   : > { %1472 = vst [vmem:[%s3228_s5 + $0x30] sm:$0xff] %v1412_v58 }
 0x4c7   : > { %1473 = vst [vmem:[%s3228_s5 + $0x38] sm:$0xff] %v1413_v35 }
 0x4c8   : > { %1474 = vst [vmem:[%s3228_s5 + $0x40] sm:$0xff] %v1414_v1 }
 0x4c9   : > { %1475 = vst [vmem:[%s3228_s5 + $0x48] sm:$0xff] %v1415_v10 }
 0x4ca   : > { %1476 = vst [vmem:[%s3228_s5 + $0x50] sm:$0xff] %v1416_v5 }
 0x4cb   : > { %1477 = vst [vmem:[%s3228_s5 + $0x58] sm:$0xff] %v1417_v22 }
 0x4cc   : > { %1478 = vst [vmem:[%s3228_s5 + $0x60] sm:$0xff] %v3086_v36 }
 0x4cd   : > { %1479 = vst [vmem:[%s3228_s5 + $0x68] sm:$0xff] %v3095_v48 }
 0x4ce   : > { %1480 = vst [vmem:[%s3228_s5 + $0x70] sm:$0xff] %v3106_v37 }
 0x4cf   : > { %1481 = vst [vmem:[%s3228_s5 + $0x78] sm:$0xff] %v3115_v47 }
 0x4d0 PF: > { %s18_s23 = sadd.s32 1, %s2321_s23   ;;  %s3313_s18 = smov %s2305_s19 }
 0x4d1   : > { %p15_p9 = scmp.ge.s32.totalorder %s18_s23, 5   ;;  %s3314_s19 = smov %s2309_s20 }
 0x4d2   : > { %s3315_s20 = smov %s2404_s30  ;;  %s3316_s21 = smov %s2317_s22 }
 0x4d3   : > { %s3317_s22 = smov %s3319_s25  ;;  %17 = sbr.rel (!%p15_p9) target bundleno = 4 (0x4), region = 122 }
 0x4d8   :  { %1493 = vsyncpa [#allocation4], 1 }
 0x4d9   :  { %1495 = vsyncpa [#allocation4 + $0x1], 1 }

</bundles_post_ra>
